<compile_context>
chip_gen: v7x
topology: tpu7x:2x2x1
jax: 0.10.0
libtpu: 0.0.40
codegen_flags: <defaults>
</compile_context>

<pallas_src>
import functools

import jax
import jax.numpy as jnp
from jax.experimental import pallas as pl
from jax.experimental.pallas import tpu as pltpu

BN_EPS = 1e-5


# ----------------------------- Pallas kernel -------------------------------- #

def gin_fused_kernel(a_ref, h_ref, w1_ref, w2_ref, b1_ref, b2_ref,
                     wp_ref, bias_ref, out_ref, *, num_layers):
    """One graph per grid step: 4x (sum-aggregate + MLP + BN + ReLU) + pooled head.

    a_ref:    [1, N, N]          dense adjacency for this graph
    h_ref:    [1, N, H]          input features, zero-padded to hidden width H
    w1_ref:   [L, H, H]          MLP first Linear with BN1 scale folded in
    w2_ref:   [L, H, H]          MLP second Linear with outer-BN scale folded in
    b1_ref:   [L, 1, H]          BN1 shift
    b2_ref:   [L, 1, H]          outer-BN shift
    wp_ref:   [(L+1)*H, out]     all prediction Linears stacked along the contraction
    bias_ref: [1, out]           pre-summed prediction biases
    out_ref:  [1, 1, out]        summed score over all hidden representations
    """
    cdt = w1_ref.dtype                       # matmul operand dtype (f32 or bf16)
    a = a_ref[0]                             # [N, N]
    h = h_ref[0].astype(jnp.float32)         # [N, H]; elementwise stays f32 (v5e-safe)

    # SumPooling of every hidden representation (raw input is rep 0): XLU reduce.
    pooled = [jnp.sum(h, axis=0, keepdims=True)]                     # [1, H]

    for layer in range(num_layers):          # small static unroll, state stays on-chip
        # GINConv with learn_eps=False (eps = 0): (1 + eps) * h + sum_aggregate(h)
        x = h + jnp.dot(a, h.astype(a.dtype), preferred_element_type=jnp.float32)

        # MLP: relu(BN1(x @ W1)) @ W2  -- BN scales pre-folded into the weights,
        # only the shifts remain as broadcast adds.
        z = jnp.dot(x.astype(cdt), w1_ref[layer], preferred_element_type=jnp.float32)
        z = jnp.maximum(z + b1_ref[layer], 0.0)
        z = jnp.dot(z.astype(cdt), w2_ref[layer], preferred_element_type=jnp.float32)

        # Outer BatchNorm (scale folded into W2) + ReLU
        h = jnp.maximum(z + b2_ref[layer], 0.0)

        pooled.append(jnp.sum(h, axis=0, keepdims=True))             # [1, H]

    # All (L+1) prediction heads collapsed into ONE matmul over a 160-deep
    # contraction (much better MXU fill than 5 tiny [*,32]@[32,8] matmuls).
    pooled_all = jnp.concatenate(pooled, axis=1)                     # [1, (L+1)*H]
    score = jnp.dot(pooled_all, wp_ref[...],
                    preferred_element_type=jnp.float32) + bias_ref[...]
    out_ref[0] = score


# ------------------------------ JAX wrapper ---------------------------------- #

def pack_params(gin_params, pred_params, hidden_dim):
    """Stack per-layer params, zero-pad layer-0 matrices input_dim -> hidden_dim,
    fold eval-mode BN scales into W1/W2, pack prediction heads into one matrix."""
    w1s, w2s, b1s, b2s = [], [], [], []
    for (w1, w2, s1, b1, s2, b2) in gin_params:
        if w1.shape[0] < hidden_dim:
            w1 = jnp.pad(w1, ((0, hidden_dim - w1.shape[0]), (0, 0)))
        w1s.append(w1 * s1)                  # (x @ W1) * s1 == x @ (W1 * s1)
        w2s.append(w2 * s2)                  # (z @ W2) * s2 == z @ (W2 * s2)
        b1s.append(b1)
        b2s.append(b2)

    wps = []
    bias = jnp.zeros((1, pred_params[0][0].shape[1]), jnp.float32)
    for (wp, bp) in pred_params:
        if wp.shape[0] < hidden_dim:
            wp = jnp.pad(wp, ((0, hidden_dim - wp.shape[0]), (0, 0)))
        wps.append(wp)
        bias = bias + bp                     # all head biases pre-summed
    wp_all = jnp.concatenate(wps, axis=0)    # [(L+1)*H, out]

    return (jnp.stack(w1s), jnp.stack(w2s), jnp.stack(b1s), jnp.stack(b2s),
            wp_all, bias)


def gin_forward(adj, h, gin_params, pred_params, *, bf16_matmul=False):
    """Graph-batched fused GIN forward.  adj: [B,N,N], h: [B,N,in_dim] -> [B,out]."""
    B, n, in_dim = h.shape
    hidden_dim = gin_params[0][1].shape[1]
    out_dim = pred_params[0][0].shape[1]
    num_layers = len(gin_params)

    h_pad = h if in_dim == hidden_dim else jnp.pad(
        h, ((0, 0), (0, 0), (0, hidden_dim - in_dim)))
    w1s, w2s, b1s, b2s, wp_all, bias = pack_params(gin_params, pred_params, hidden_dim)

    if bf16_matmul:
        # v6e/v7x option: halves MXU passes & DMA bytes; accumulation stays f32
        # in-kernel (preferred_element_type) and elementwise work stays f32.
        adj, h_pad = adj.astype(jnp.bfloat16), h_pad.astype(jnp.bfloat16)
        w1s, w2s = w1s.astype(jnp.bfloat16), w2s.astype(jnp.bfloat16)

    def full(arr):  # whole-array operand, constant across the grid (stays resident)
        return pl.BlockSpec(arr.shape, lambda b: (0,) * arr.ndim)

    kernel = functools.partial(gin_fused_kernel, num_layers=num_layers)
    out = pl.pallas_call(
        kernel,
        out_shape=jax.ShapeDtypeStruct((B, 1, out_dim), jnp.float32),
        grid=(B,),                                        # one graph per grid step
        in_specs=[
            pl.BlockSpec((1, n, n), lambda b: (b, 0, 0)),            # adjacency
            pl.BlockSpec((1, n, hidden_dim), lambda b: (b, 0, 0)),   # features
            full(w1s), full(w2s), full(b1s), full(b2s), full(wp_all), full(bias),
        ],
        out_specs=pl.BlockSpec((1, 1, out_dim), lambda b: (b, 0, 0)),
        compiler_params=pltpu.CompilerParams(
            dimension_semantics=("parallel",)),   # shard graphs across v7x's 2 TCs
    )(adj, h_pad, w1s, w2s, b1s, b2s, wp_all, bias)
    return out[:, 0, :]


# --------------------------- reference (pure JAX) ----------------------------- #

def gin_forward_ref(adj, h, gin_params, pred_params):
    """Unfolded, per-graph reference (validates the BN fold + head packing)."""
    def single_graph(a, x0):
        hidden_rep = [x0]
        cur = x0
        for (w1, w2, s1, b1, s2, b2) in gin_params:
            x = cur + a @ cur
            z = jnp.maximum((x @ w1) * s1 + b1, 0.0)
            z = z @ w2
            cur = jnp.maximum(z * s2 + b2, 0.0)
            hidden_rep.append(cur)
        score = jnp.zeros((1, pred_params[0][0].shape[1]), jnp.float32)
        for i, hr in enumerate(hidden_rep):
            wp, bp = pred_params[i]
            pooled = jnp.sum(hr, axis=0, keepdims=True)
            score = score + pooled @ wp + bp        # Dropout(0.5) eval = identity
        return score[0]
    return jax.vmap(single_graph)(adj, h)


# ------------------------- parameter construction ----------------------------- #

def bn_affine(key, dim):
    """Deterministic BatchNorm1d params folded into (scale, shift) for eval mode."""
    k1, k2, k3, k4 = jax.random.split(key, 4)
    gamma = 1.0 + 0.1 * jax.random.normal(k1, (1, dim), jnp.float32)
    beta = 0.1 * jax.random.normal(k2, (1, dim), jnp.float32)
    running_mean = 0.1 * jax.random.normal(k3, (1, dim), jnp.float32)
    running_var = 0.5 + jnp.abs(jax.random.normal(k4, (1, dim), jnp.float32)) * 0.5
    scale = gamma / jnp.sqrt(running_var + BN_EPS)
    shift = beta - running_mean * scale
    return scale, shift


def make_params(key, input_dim, hidden_dim, output_dim, num_layers=5):
    gin_params = []
    pred_params = []
    keys = jax.random.split(key, 4 * (num_layers - 1) + 2 * num_layers)
    ki = 0
    for layer in range(num_layers - 1):
        in_dim = input_dim if layer == 0 else hidden_dim
        # nn.Linear stores [out, in]; we pass the transposed [in, out] matrix.
        w1 = 0.1 * jax.random.normal(keys[ki], (in_dim, hidden_dim), jnp.float32); ki += 1
        w2 = 0.1 * jax.random.normal(keys[ki], (hidden_dim, hidden_dim), jnp.float32); ki += 1
        s1, b1 = bn_affine(keys[ki], hidden_dim); ki += 1          # MLP's inner BN
        s2, b2 = bn_affine(keys[ki], hidden_dim); ki += 1          # outer BN
        gin_params.append((w1, w2, s1, b1, s2, b2))
    for layer in range(num_layers):
        in_dim = input_dim if layer == 0 else hidden_dim
        wp = 0.1 * jax.random.normal(keys[ki], (in_dim, output_dim), jnp.float32); ki += 1
        bp = 0.1 * jax.random.normal(keys[ki], (1, output_dim), jnp.float32); ki += 1
        pred_params.append((wp, bp))
    return gin_params, pred_params


# ---------------------------------- main --------------------------------------- #

if __name__ == "__main__":
    key = jax.random.PRNGKey(0)
    k_adj, k_feat, k_param = jax.random.split(key, 3)

    B = 8             # graphs per batch (grid axis, "parallel")
    N = 64            # nodes per graph
    INPUT_DIM = 16
    HIDDEN_DIM = 32
    OUTPUT_DIM = 8

    # Dense adjacency (SUM aggregator == A @ h), no self loops.
    adj = jax.random.bernoulli(k_adj, 0.2, (B, N, N)).astype(jnp.float32)
    adj = adj * (1.0 - jnp.eye(N, dtype=jnp.float32))

    h = jax.random.normal(k_feat, (B, N, INPUT_DIM), jnp.float32)

    gin_params, pred_params = make_params(k_param, INPUT_DIM, HIDDEN_DIM, OUTPUT_DIM)

    # TODO(synk): Dropout(0.5) / BN running-stat updates omitted — eval mode only.
    out = gin_forward(adj, h, gin_params, pred_params)   # f32 path (portable, v5e-safe)
    out = jax.block_until_ready(out)

    ref = gin_forward_ref(adj, h, gin_params, pred_params)
    assert out.shape == (B, OUTPUT_DIM)
    assert jnp.all(jnp.isfinite(out))
    assert jnp.allclose(out, ref, rtol=1e-4, atol=1e-3), (out, ref)
    print("KERNEL_OK")
</pallas_src>

<mosaic_0001>
module attributes {stable_mosaic.version = 11 : i64} {
  func.func @gin_fused_kernel(%arg0: i32, %arg1: memref<1x64x64xf32, #tpu.memory_space<vmem>>, %arg2: memref<1x64x32xf32, #tpu.memory_space<vmem>>, %arg3: memref<4x32x32xf32, #tpu.memory_space<vmem>>, %arg4: memref<4x32x32xf32, #tpu.memory_space<vmem>>, %arg5: memref<4x1x32xf32, #tpu.memory_space<vmem>>, %arg6: memref<4x1x32xf32, #tpu.memory_space<vmem>>, %arg7: memref<160x8xf32, #tpu.memory_space<vmem>>, %arg8: memref<1x8xf32, #tpu.memory_space<vmem>>, %arg9: memref<1x1x8xf32, #tpu.memory_space<vmem>>) attributes {dimension_semantics = [#tpu.dimension_semantics<parallel>], iteration_bounds = array<i64: 8>, scalar_prefetch = 0 : i64, scratch_operands = 0 : i64, tpu.core_type = #tpu.core_type<tc>, window_params = [{transform_indices = @transform_0, window_bounds = array<i64: 1, 64, 64>}, {transform_indices = @transform_1, window_bounds = array<i64: 1, 64, 32>}, {pipeline_mode = #tpu.pipeline_mode<synchronous>, transform_indices = @transform_2, window_bounds = array<i64: 4, 32, 32>}, {pipeline_mode = #tpu.pipeline_mode<synchronous>, transform_indices = @transform_3, window_bounds = array<i64: 4, 32, 32>}, {pipeline_mode = #tpu.pipeline_mode<synchronous>, transform_indices = @transform_4, window_bounds = array<i64: 4, 1, 32>}, {pipeline_mode = #tpu.pipeline_mode<synchronous>, transform_indices = @transform_5, window_bounds = array<i64: 4, 1, 32>}, {pipeline_mode = #tpu.pipeline_mode<synchronous>, transform_indices = @transform_6, window_bounds = array<i64: 160, 8>}, {pipeline_mode = #tpu.pipeline_mode<synchronous>, transform_indices = @transform_7, window_bounds = array<i64: 1, 8>}, {transform_indices = @transform_8, window_bounds = array<i64: 1, 1, 8>}]} {
    %c0 = arith.constant 0 : index
    %c0_0 = arith.constant 0 : index
    %c0_1 = arith.constant 0 : index
    %0 = vector.load %arg1[%c0, %c0_0, %c0_1] : memref<1x64x64xf32, #tpu.memory_space<vmem>>, vector<1x64x64xf32>
    %1 = vector.shape_cast %0 : vector<1x64x64xf32> to vector<64x64xf32>
    %c0_2 = arith.constant 0 : index
    %c0_3 = arith.constant 0 : index
    %c0_4 = arith.constant 0 : index
    %2 = vector.load %arg2[%c0_2, %c0_3, %c0_4] : memref<1x64x32xf32, #tpu.memory_space<vmem>>, vector<1x64x32xf32>
    %3 = vector.shape_cast %2 : vector<1x64x32xf32> to vector<64x32xf32>
    %cst = arith.constant dense<0.000000e+00> : vector<32xf32>
    %4 = vector.multi_reduction <add>, %3, %cst [0] : vector<64x32xf32> to vector<32xf32>
    %5 = vector.shape_cast %4 : vector<32xf32> to vector<1x32xf32>
    %cst_5 = arith.constant dense<0.000000e+00> : vector<64x32xf32>
    %6 = tpu.matmul %1, %3, %cst_5 {dimension_numbers = #tpu.dot_dimension_numbers<[1], [0], [0], [1], [0, 0, 1, 1], [], []>} : vector<64x64xf32>, vector<64x32xf32>, vector<64x32xf32> -> vector<64x32xf32>
    %7 = arith.addf %3, %6 : vector<64x32xf32>
    %c0_6 = arith.constant 0 : index
    %c0_7 = arith.constant 0 : index
    %c0_8 = arith.constant 0 : index
    %8 = vector.load %arg3[%c0_6, %c0_7, %c0_8] : memref<4x32x32xf32, #tpu.memory_space<vmem>>, vector<1x32x32xf32>
    %9 = vector.shape_cast %8 : vector<1x32x32xf32> to vector<32x32xf32>
    %cst_9 = arith.constant dense<0.000000e+00> : vector<64x32xf32>
    %10 = tpu.matmul %7, %9, %cst_9 {dimension_numbers = #tpu.dot_dimension_numbers<[1], [0], [0], [1], [0, 0, 1, 1], [], []>} : vector<64x32xf32>, vector<32x32xf32>, vector<64x32xf32> -> vector<64x32xf32>
    %c0_10 = arith.constant 0 : index
    %c0_11 = arith.constant 0 : index
    %c0_12 = arith.constant 0 : index
    %11 = vector.load %arg5[%c0_10, %c0_11, %c0_12] : memref<4x1x32xf32, #tpu.memory_space<vmem>>, vector<1x1x32xf32>
    %12 = vector.shape_cast %11 : vector<1x1x32xf32> to vector<1x32xf32>
    %13 = vector.broadcast %12 : vector<1x32xf32> to vector<64x32xf32>
    %14 = arith.addf %10, %13 : vector<64x32xf32>
    %cst_13 = arith.constant 0.000000e+00 : f32
    %15 = vector.broadcast %cst_13 : f32 to vector<64x32xf32>
    %16 = arith.maximumf %14, %15 : vector<64x32xf32>
    %c0_14 = arith.constant 0 : index
    %c0_15 = arith.constant 0 : index
    %c0_16 = arith.constant 0 : index
    %17 = vector.load %arg4[%c0_14, %c0_15, %c0_16] : memref<4x32x32xf32, #tpu.memory_space<vmem>>, vector<1x32x32xf32>
    %18 = vector.shape_cast %17 : vector<1x32x32xf32> to vector<32x32xf32>
    %cst_17 = arith.constant dense<0.000000e+00> : vector<64x32xf32>
    %19 = tpu.matmul %16, %18, %cst_17 {dimension_numbers = #tpu.dot_dimension_numbers<[1], [0], [0], [1], [0, 0, 1, 1], [], []>} : vector<64x32xf32>, vector<32x32xf32>, vector<64x32xf32> -> vector<64x32xf32>
    %c0_18 = arith.constant 0 : index
    %c0_19 = arith.constant 0 : index
    %c0_20 = arith.constant 0 : index
    %20 = vector.load %arg6[%c0_18, %c0_19, %c0_20] : memref<4x1x32xf32, #tpu.memory_space<vmem>>, vector<1x1x32xf32>
    %21 = vector.shape_cast %20 : vector<1x1x32xf32> to vector<1x32xf32>
    %22 = vector.broadcast %21 : vector<1x32xf32> to vector<64x32xf32>
    %23 = arith.addf %19, %22 : vector<64x32xf32>
    %cst_21 = arith.constant 0.000000e+00 : f32
    %24 = vector.broadcast %cst_21 : f32 to vector<64x32xf32>
    %25 = arith.maximumf %23, %24 : vector<64x32xf32>
    %cst_22 = arith.constant dense<0.000000e+00> : vector<32xf32>
    %26 = vector.multi_reduction <add>, %25, %cst_22 [0] : vector<64x32xf32> to vector<32xf32>
    %27 = vector.shape_cast %26 : vector<32xf32> to vector<1x32xf32>
    %cst_23 = arith.constant dense<0.000000e+00> : vector<64x32xf32>
    %28 = tpu.matmul %1, %25, %cst_23 {dimension_numbers = #tpu.dot_dimension_numbers<[1], [0], [0], [1], [0, 0, 1, 1], [], []>} : vector<64x64xf32>, vector<64x32xf32>, vector<64x32xf32> -> vector<64x32xf32>
    %29 = arith.addf %25, %28 : vector<64x32xf32>
    %c1 = arith.constant 1 : index
    %c0_24 = arith.constant 0 : index
    %c0_25 = arith.constant 0 : index
    %30 = vector.load %arg3[%c1, %c0_24, %c0_25] : memref<4x32x32xf32, #tpu.memory_space<vmem>>, vector<1x32x32xf32>
    %31 = vector.shape_cast %30 : vector<1x32x32xf32> to vector<32x32xf32>
    %cst_26 = arith.constant dense<0.000000e+00> : vector<64x32xf32>
    %32 = tpu.matmul %29, %31, %cst_26 {dimension_numbers = #tpu.dot_dimension_numbers<[1], [0], [0], [1], [0, 0, 1, 1], [], []>} : vector<64x32xf32>, vector<32x32xf32>, vector<64x32xf32> -> vector<64x32xf32>
    %c1_27 = arith.constant 1 : index
    %c0_28 = arith.constant 0 : index
    %c0_29 = arith.constant 0 : index
    %33 = vector.load %arg5[%c1_27, %c0_28, %c0_29] : memref<4x1x32xf32, #tpu.memory_space<vmem>>, vector<1x1x32xf32>
    %34 = vector.shape_cast %33 : vector<1x1x32xf32> to vector<1x32xf32>
    %35 = vector.broadcast %34 : vector<1x32xf32> to vector<64x32xf32>
    %36 = arith.addf %32, %35 : vector<64x32xf32>
    %cst_30 = arith.constant 0.000000e+00 : f32
    %37 = vector.broadcast %cst_30 : f32 to vector<64x32xf32>
    %38 = arith.maximumf %36, %37 : vector<64x32xf32>
    %c1_31 = arith.constant 1 : index
    %c0_32 = arith.constant 0 : index
    %c0_33 = arith.constant 0 : index
    %39 = vector.load %arg4[%c1_31, %c0_32, %c0_33] : memref<4x32x32xf32, #tpu.memory_space<vmem>>, vector<1x32x32xf32>
    %40 = vector.shape_cast %39 : vector<1x32x32xf32> to vector<32x32xf32>
    %cst_34 = arith.constant dense<0.000000e+00> : vector<64x32xf32>
    %41 = tpu.matmul %38, %40, %cst_34 {dimension_numbers = #tpu.dot_dimension_numbers<[1], [0], [0], [1], [0, 0, 1, 1], [], []>} : vector<64x32xf32>, vector<32x32xf32>, vector<64x32xf32> -> vector<64x32xf32>
    %c1_35 = arith.constant 1 : index
    %c0_36 = arith.constant 0 : index
    %c0_37 = arith.constant 0 : index
    %42 = vector.load %arg6[%c1_35, %c0_36, %c0_37] : memref<4x1x32xf32, #tpu.memory_space<vmem>>, vector<1x1x32xf32>
    %43 = vector.shape_cast %42 : vector<1x1x32xf32> to vector<1x32xf32>
    %44 = vector.broadcast %43 : vector<1x32xf32> to vector<64x32xf32>
    %45 = arith.addf %41, %44 : vector<64x32xf32>
    %cst_38 = arith.constant 0.000000e+00 : f32
    %46 = vector.broadcast %cst_38 : f32 to vector<64x32xf32>
    %47 = arith.maximumf %45, %46 : vector<64x32xf32>
    %cst_39 = arith.constant dense<0.000000e+00> : vector<32xf32>
    %48 = vector.multi_reduction <add>, %47, %cst_39 [0] : vector<64x32xf32> to vector<32xf32>
    %49 = vector.shape_cast %48 : vector<32xf32> to vector<1x32xf32>
    %cst_40 = arith.constant dense<0.000000e+00> : vector<64x32xf32>
    %50 = tpu.matmul %1, %47, %cst_40 {dimension_numbers = #tpu.dot_dimension_numbers<[1], [0], [0], [1], [0, 0, 1, 1], [], []>} : vector<64x64xf32>, vector<64x32xf32>, vector<64x32xf32> -> vector<64x32xf32>
    %51 = arith.addf %47, %50 : vector<64x32xf32>
    %c2 = arith.constant 2 : index
    %c0_41 = arith.constant 0 : index
    %c0_42 = arith.constant 0 : index
    %52 = vector.load %arg3[%c2, %c0_41, %c0_42] : memref<4x32x32xf32, #tpu.memory_space<vmem>>, vector<1x32x32xf32>
    %53 = vector.shape_cast %52 : vector<1x32x32xf32> to vector<32x32xf32>
    %cst_43 = arith.constant dense<0.000000e+00> : vector<64x32xf32>
    %54 = tpu.matmul %51, %53, %cst_43 {dimension_numbers = #tpu.dot_dimension_numbers<[1], [0], [0], [1], [0, 0, 1, 1], [], []>} : vector<64x32xf32>, vector<32x32xf32>, vector<64x32xf32> -> vector<64x32xf32>
    %c2_44 = arith.constant 2 : index
    %c0_45 = arith.constant 0 : index
    %c0_46 = arith.constant 0 : index
    %55 = vector.load %arg5[%c2_44, %c0_45, %c0_46] : memref<4x1x32xf32, #tpu.memory_space<vmem>>, vector<1x1x32xf32>
    %56 = vector.shape_cast %55 : vector<1x1x32xf32> to vector<1x32xf32>
    %57 = vector.broadcast %56 : vector<1x32xf32> to vector<64x32xf32>
    %58 = arith.addf %54, %57 : vector<64x32xf32>
    %cst_47 = arith.constant 0.000000e+00 : f32
    %59 = vector.broadcast %cst_47 : f32 to vector<64x32xf32>
    %60 = arith.maximumf %58, %59 : vector<64x32xf32>
    %c2_48 = arith.constant 2 : index
    %c0_49 = arith.constant 0 : index
    %c0_50 = arith.constant 0 : index
    %61 = vector.load %arg4[%c2_48, %c0_49, %c0_50] : memref<4x32x32xf32, #tpu.memory_space<vmem>>, vector<1x32x32xf32>
    %62 = vector.shape_cast %61 : vector<1x32x32xf32> to vector<32x32xf32>
    %cst_51 = arith.constant dense<0.000000e+00> : vector<64x32xf32>
    %63 = tpu.matmul %60, %62, %cst_51 {dimension_numbers = #tpu.dot_dimension_numbers<[1], [0], [0], [1], [0, 0, 1, 1], [], []>} : vector<64x32xf32>, vector<32x32xf32>, vector<64x32xf32> -> vector<64x32xf32>
    %c2_52 = arith.constant 2 : index
    %c0_53 = arith.constant 0 : index
    %c0_54 = arith.constant 0 : index
    %64 = vector.load %arg6[%c2_52, %c0_53, %c0_54] : memref<4x1x32xf32, #tpu.memory_space<vmem>>, vector<1x1x32xf32>
    %65 = vector.shape_cast %64 : vector<1x1x32xf32> to vector<1x32xf32>
    %66 = vector.broadcast %65 : vector<1x32xf32> to vector<64x32xf32>
    %67 = arith.addf %63, %66 : vector<64x32xf32>
    %cst_55 = arith.constant 0.000000e+00 : f32
    %68 = vector.broadcast %cst_55 : f32 to vector<64x32xf32>
    %69 = arith.maximumf %67, %68 : vector<64x32xf32>
    %cst_56 = arith.constant dense<0.000000e+00> : vector<32xf32>
    %70 = vector.multi_reduction <add>, %69, %cst_56 [0] : vector<64x32xf32> to vector<32xf32>
    %71 = vector.shape_cast %70 : vector<32xf32> to vector<1x32xf32>
    %cst_57 = arith.constant dense<0.000000e+00> : vector<64x32xf32>
    %72 = tpu.matmul %1, %69, %cst_57 {dimension_numbers = #tpu.dot_dimension_numbers<[1], [0], [0], [1], [0, 0, 1, 1], [], []>} : vector<64x64xf32>, vector<64x32xf32>, vector<64x32xf32> -> vector<64x32xf32>
    %73 = arith.addf %69, %72 : vector<64x32xf32>
    %c3 = arith.constant 3 : index
    %c0_58 = arith.constant 0 : index
    %c0_59 = arith.constant 0 : index
    %74 = vector.load %arg3[%c3, %c0_58, %c0_59] : memref<4x32x32xf32, #tpu.memory_space<vmem>>, vector<1x32x32xf32>
    %75 = vector.shape_cast %74 : vector<1x32x32xf32> to vector<32x32xf32>
    %cst_60 = arith.constant dense<0.000000e+00> : vector<64x32xf32>
    %76 = tpu.matmul %73, %75, %cst_60 {dimension_numbers = #tpu.dot_dimension_numbers<[1], [0], [0], [1], [0, 0, 1, 1], [], []>} : vector<64x32xf32>, vector<32x32xf32>, vector<64x32xf32> -> vector<64x32xf32>
    %c3_61 = arith.constant 3 : index
    %c0_62 = arith.constant 0 : index
    %c0_63 = arith.constant 0 : index
    %77 = vector.load %arg5[%c3_61, %c0_62, %c0_63] : memref<4x1x32xf32, #tpu.memory_space<vmem>>, vector<1x1x32xf32>
    %78 = vector.shape_cast %77 : vector<1x1x32xf32> to vector<1x32xf32>
    %79 = vector.broadcast %78 : vector<1x32xf32> to vector<64x32xf32>
    %80 = arith.addf %76, %79 : vector<64x32xf32>
    %cst_64 = arith.constant 0.000000e+00 : f32
    %81 = vector.broadcast %cst_64 : f32 to vector<64x32xf32>
    %82 = arith.maximumf %80, %81 : vector<64x32xf32>
    %c3_65 = arith.constant 3 : index
    %c0_66 = arith.constant 0 : index
    %c0_67 = arith.constant 0 : index
    %83 = vector.load %arg4[%c3_65, %c0_66, %c0_67] : memref<4x32x32xf32, #tpu.memory_space<vmem>>, vector<1x32x32xf32>
    %84 = vector.shape_cast %83 : vector<1x32x32xf32> to vector<32x32xf32>
    %cst_68 = arith.constant dense<0.000000e+00> : vector<64x32xf32>
    %85 = tpu.matmul %82, %84, %cst_68 {dimension_numbers = #tpu.dot_dimension_numbers<[1], [0], [0], [1], [0, 0, 1, 1], [], []>} : vector<64x32xf32>, vector<32x32xf32>, vector<64x32xf32> -> vector<64x32xf32>
    %c3_69 = arith.constant 3 : index
    %c0_70 = arith.constant 0 : index
    %c0_71 = arith.constant 0 : index
    %86 = vector.load %arg6[%c3_69, %c0_70, %c0_71] : memref<4x1x32xf32, #tpu.memory_space<vmem>>, vector<1x1x32xf32>
    %87 = vector.shape_cast %86 : vector<1x1x32xf32> to vector<1x32xf32>
    %88 = vector.broadcast %87 : vector<1x32xf32> to vector<64x32xf32>
    %89 = arith.addf %85, %88 : vector<64x32xf32>
    %cst_72 = arith.constant 0.000000e+00 : f32
    %90 = vector.broadcast %cst_72 : f32 to vector<64x32xf32>
    %91 = arith.maximumf %89, %90 : vector<64x32xf32>
    %cst_73 = arith.constant dense<0.000000e+00> : vector<32xf32>
    %92 = vector.multi_reduction <add>, %91, %cst_73 [0] : vector<64x32xf32> to vector<32xf32>
    %93 = vector.shape_cast %92 : vector<32xf32> to vector<1x32xf32>
    %94 = tpu.concatenate %5, %27, %49, %71, %93 in 1 : vector<1x32xf32>, vector<1x32xf32>, vector<1x32xf32>, vector<1x32xf32>, vector<1x32xf32> -> vector<1x160xf32>
    %c0_74 = arith.constant 0 : index
    %c0_75 = arith.constant 0 : index
    %95 = vector.load %arg7[%c0_74, %c0_75] : memref<160x8xf32, #tpu.memory_space<vmem>>, vector<160x8xf32>
    %cst_76 = arith.constant dense<0.000000e+00> : vector<1x8xf32>
    %96 = tpu.matmul %94, %95, %cst_76 {dimension_numbers = #tpu.dot_dimension_numbers<[1], [0], [0], [1], [0, 0, 1, 1], [], []>} : vector<1x160xf32>, vector<160x8xf32>, vector<1x8xf32> -> vector<1x8xf32>
    %c0_77 = arith.constant 0 : index
    %c0_78 = arith.constant 0 : index
    %97 = vector.load %arg8[%c0_77, %c0_78] : memref<1x8xf32, #tpu.memory_space<vmem>>, vector<1x8xf32>
    %98 = arith.addf %96, %97 : vector<1x8xf32>
    %c0_79 = arith.constant 0 : index
    %c0_80 = arith.constant 0 : index
    %c0_81 = arith.constant 0 : index
    %99 = vector.load %arg9[%c0_79, %c0_80, %c0_81] : memref<1x1x8xf32, #tpu.memory_space<vmem>>, vector<1x1x8xf32>
    %100 = vector.shape_cast %99 : vector<1x1x8xf32> to vector<1x8xf32>
    %101 = vector.shape_cast %98 : vector<1x8xf32> to vector<1x1x8xf32>
    tpu.vector_store %arg9[%c0_79, %c0_80, %c0_81], %101 {strides = array<i32>} : memref<1x1x8xf32, #tpu.memory_space<vmem>>, vector<1x1x8xf32>,
    return
  }
  func.func @transform_0(%arg0: i32) -> (i32, i32, i32) {
    %c0_i32 = arith.constant 0 : i32
    %c0_i32_0 = arith.constant 0 : i32
    %c0_i32_1 = arith.constant 0 : i32
    return %arg0, %c0_i32, %c0_i32_0 : i32, i32, i32
  }
  func.func @transform_1(%arg0: i32) -> (i32, i32, i32) {
    %c0_i32 = arith.constant 0 : i32
    %c0_i32_0 = arith.constant 0 : i32
    %c0_i32_1 = arith.constant 0 : i32
    return %arg0, %c0_i32, %c0_i32_0 : i32, i32, i32
  }
  func.func @transform_2(%arg0: i32) -> (i32, i32, i32) {
    %c0_i32 = arith.constant 0 : i32
    %c0_i32_0 = arith.constant 0 : i32
    %c0_i32_1 = arith.constant 0 : i32
    %c0_i32_2 = arith.constant 0 : i32
    return %c0_i32, %c0_i32_0, %c0_i32_1 : i32, i32, i32
  }
  func.func @transform_3(%arg0: i32) -> (i32, i32, i32) {
    %c0_i32 = arith.constant 0 : i32
    %c0_i32_0 = arith.constant 0 : i32
    %c0_i32_1 = arith.constant 0 : i32
    %c0_i32_2 = arith.constant 0 : i32
    return %c0_i32, %c0_i32_0, %c0_i32_1 : i32, i32, i32
  }
  func.func @transform_4(%arg0: i32) -> (i32, i32, i32) {
    %c0_i32 = arith.constant 0 : i32
    %c0_i32_0 = arith.constant 0 : i32
    %c0_i32_1 = arith.constant 0 : i32
    %c0_i32_2 = arith.constant 0 : i32
    return %c0_i32, %c0_i32_0, %c0_i32_1 : i32, i32, i32
  }
  func.func @transform_5(%arg0: i32) -> (i32, i32, i32) {
    %c0_i32 = arith.constant 0 : i32
    %c0_i32_0 = arith.constant 0 : i32
    %c0_i32_1 = arith.constant 0 : i32
    %c0_i32_2 = arith.constant 0 : i32
    return %c0_i32, %c0_i32_0, %c0_i32_1 : i32, i32, i32
  }
  func.func @transform_6(%arg0: i32) -> (i32, i32) {
    %c0_i32 = arith.constant 0 : i32
    %c0_i32_0 = arith.constant 0 : i32
    %c0_i32_1 = arith.constant 0 : i32
    return %c0_i32, %c0_i32_0 : i32, i32
  }
  func.func @transform_7(%arg0: i32) -> (i32, i32) {
    %c0_i32 = arith.constant 0 : i32
    %c0_i32_0 = arith.constant 0 : i32
    %c0_i32_1 = arith.constant 0 : i32
    return %c0_i32, %c0_i32_0 : i32, i32
  }
  func.func @transform_8(%arg0: i32) -> (i32, i32, i32) {
    %c0_i32 = arith.constant 0 : i32
    %c0_i32_0 = arith.constant 0 : i32
    %c0_i32_1 = arith.constant 0 : i32
    return %arg0, %c0_i32, %c0_i32_0 : i32, i32, i32
  }
}

</mosaic_0001>

<bundles_post_ra>
// kernel: tpu_custom_call.1
= control target key start
LH: loop header
LB: loop body
LE: loop exit
PB: predicated region body
PF: predicated region fallthrough
CT: control target
= control target key end

     0   :  { %13 = vsyncpa [#allocation3], 0  ;;  %s3852_s0 = inlined_call_operand.vmem [shape: f32[8,64,64], index: 0, kind: input, shape index: {}]   ;;  %s3853_s1 = inlined_call_operand.vmem [shape: f32[8,64,32], index: 1, kind: input, shape index: {}]   ;;  %s3854_s2 = inlined_call_operand.vmem [shape: f32[4,32,32], index: 2, kind: input, shape index: {}]   ;;  %s3855_s3 = inlined_call_operand.vmem [shape: f32[4,32,32], index: 3, kind: input, shape index: {}]   ;;  %s3856_s4 = inlined_call_operand.vmem [shape: f32[4,1,32], index: 4, kind: input, shape index: {}]   ;;  %s3857_s5 = inlined_call_operand.vmem [shape: f32[4,1,32], index: 5, kind: input, shape index: {}]   ;;  %s3858_s6 = inlined_call_operand.vmem [shape: f32[160,8], index: 6, kind: input, shape index: {}]   ;;  %s3859_s7 = inlined_call_operand.vmem [shape: f32[1,8], index: 7, kind: input, shape index: {}]   ;;  %s3860_s8 = inlined_call_operand.hbm [shape: f32[8,1,8], index: 8, kind: output, shape index: {}]  }
   0x1   :  { %15 = vsyncpa [#allocation3 + $0x1], 0  ;;  %s3221_s27 = smov 0   ;;  %s3223_s28 = smov 0  }
   0x2   :  { %s3225_s29 = smov 0   ;;  %s3227_s30 = smov 0  }
   0x3 LB: > { %s3242_s9 = sadd.s32 4294967295, %s3169_s30   ;;  %s2310_s10 = sadd.s32 4294967294, %s3169_s30   ;;  %s3169_s30 = sphi %s3227_s30, %s3866_s30   ;;  %s3165_s29 = sphi %s3225_s29, %s3865_s29   ;;  %s3161_s28 = sphi %s3223_s28, %s3864_s28   ;;  %s3157_s27 = sphi %s3221_s27, %s3863_s27  }
   0x4   : > { %s3246_s11 = sadd.s32 1, %s3169_s30   ;;  %s206_s12 = sadd.s32 1, %s3165_s29 }
   0x5   : > { %s203_s13 = ssub.s32 %s3169_s30, %s3246_s11  ;;  %p216_p0 = scmp.ne.s32.totalorder %s3165_s29, %s3161_s28 }
   0x6   : > { %p204_p1 = scmp.eq.s32.totalorder %s203_s13, 0  ;;  %p217_p2 = scmp.eq.s32.totalorder %s3242_s9, 7 }
   0x7   : > { %p222_p3 = scmp.ne.s32.totalorder %s3161_s28, %s3157_s27  ;;  %p223_p4 = scmp.eq.s32.totalorder %s2310_s10, 7 }
   0x8   : > { %s3257_s14 = scalar_select %p204_p1, %s3165_s29, %s206_s12  }
   0x9   : > { %p3259_p5 = por %p217_p2, %p216_p0  ;;  %p3263_p6 = por %p223_p4, %p222_p3 }
   0xa   : > { %p2313_p7 = scmp.ge.s32.totalorder %s3169_s30, 1  ;;  %p275_p8 = scmp.lt.s32.totalorder %s3169_s30, 9 }
   0xc   : > { %p276_p9 = pnand %p2313_p7, %p275_p8 }
   0xd   : > { %p313_p10 = scmp.lt.s32.totalorder (!%p276_p9), %s3242_s9, 7  ;;  %v499_v0 = vld [vmem:[%s3854_s2] sm:$0xff] (!%p276_p9)  ;;  %v500_v1 = vld [vmem:[%s3854_s2 + $0x8] sm:$0xff] (!%p276_p9)  ;;  %vm361_vm0 = vcmask (!%p276_p9), 523264   ;;  %v501_v23 = vld [vmem:[%s3854_s2 + $0x10] sm:$0xff] (!%p276_p9)  ;;  %vm339_vm1 = vcmask (!%p276_p9), 261120  }
   0xe   : > { %279 = sbr.rel (%p276_p9) target bundleno = 2960 (0xb90), region = 52  ;;  %v2906_v2 = vpack.c.bf16 (!%p276_p9), %v500_v1, %v499_v0  ;;  %v502_v24 = vld [vmem:[%s3854_s2 + $0x18] sm:$0xff] (!%p276_p9)  ;;  %v647_v26 = vld [vmem:[%s3855_s3] sm:$0xff] (!%p276_p9)  ;;  %v648_v27 = vld [vmem:[%s3855_s3 + $0x8] sm:$0xff] (!%p276_p9)  ;;  %s3171_s13 = smov (!%p276_p9), 32   ;;  %vm2132_vm2 = vcmask (!%p276_p9), 785408  }
   0xf   : > { %v2910_v25 = vpack.c.bf16 (!%p276_p9), %v502_v24, %v501_v23  ;;  %v2914_v28 = vpack.c.bf16 (!%p276_p9), %v648_v27, %v647_v26  ;;  %v649_v30 = vld [vmem:[%s3855_s3 + $0x10] sm:$0xff] (!%p276_p9)  ;;  %v650_v31 = vld [vmem:[%s3855_s3 + $0x18] sm:$0xff] (!%p276_p9)  ;;  %v2326_v48 = vld [vmem:[%s3856_s4] ss:$0 sm:$0xff] (!%p276_p9)  ;;  %s2453_s17 = sshll.u32 (!%p276_p9), %s3242_s9, 4  ;;  %vm2228_vm3 = vcmask (!%p276_p9), 57344  }
  0x10   : > { %2907 = vmatprep.subr.bf16.mxu1 (!%p276_p9), %v2906_v2  ;;  %v2918_v35 = vpack.c.bf16 (!%p276_p9), %v650_v31, %v649_v30 }
  0x11   : > { %2909 = vmatpush3.bf16.msra.mxu1 (!%p276_p9), %v2906_v2 }
  0x12   : > { %2911 = vmatprep.subr.bf16.mxu1 (!%p276_p9), %v2910_v25 }
  0x15   : > { %s314_s21 = scalar_select %p313_p10, %s3242_s9, 7  ;;  %2913 = vmatpush3.bf16.msra.mxu1 %v2910_v25 }
  0x16   : > { %2915 = vmatprep.subr.bf16.mxu1 %v2914_v28  ;;  %s3175_s9 = smov [#allocation2]  }
  0x17   : > { %s2456_s22 = sshll.u32 %s314_s21, 6  ;;  %s3172_s21 = smov 64  }
  0x18   : > { %s3280_s25 = scalar_lea.vmem %s3853_s1, %s2456_s22  ;;  %s3285_s12 = scalar_lea.vmem %s3852_s0, %s2456_s22 }
  0x19   : > { %v331_v3 = vld [vmem:[%s3280_s25] sm:$0xff]  ;;  %v332_v4 = vld [vmem:[%s3280_s25 + $0x8] sm:$0xff]  ;;  %v333_v5 = vld [vmem:[%s3280_s25 + $0x10] sm:$0xff]  ;;  %s3173_s22 = smov 96   ;;  %s3111_s26 = sshll.u32 %s3175_s9, 4  ;;  %s3112_s26 = int_to_ptr.vmem [resolvable:$false] %s3111_s26 }
  0x1a   : > { %v2890_v6 = vpack.c.bf16 %v332_v4, %v331_v3  ;;  %v334_v7 = vld [vmem:[%s3280_s25 + $0x18] sm:$0xff]  ;;  %v335_v9 = vld [vmem:[%s3280_s25 + $0x20] sm:$0xff]  ;;  %v336_v10 = vld [vmem:[%s3280_s25 + $0x28] sm:$0xff]  ;;  %s3113_s10 = scalar_lea.vmem %s3112_s26, 32 }
  0x1b   : > { %v2894_v8 = vpack.c.bf16 %v334_v7, %v333_v5  ;;  %v3294_v11 = vld [vmem:[%s3285_s12] sm:$0xff]  ;;  %v2898_v12 = vpack.c.bf16 %v336_v10, %v335_v9  ;;  %v337_v13 = vld [vmem:[%s3280_s25 + $0x30] sm:$0xff]  ;;  %v338_v14 = vld [vmem:[%s3280_s25 + $0x38] sm:$0xff] }
  0x1c   : > { %2891 = vmatprep.subr.bf16.mxu0 %v2890_v6  ;;  %2634 = vmatprep.mubr.msk.f32.mxu0 %vm361_vm0, %v3294_v11  ;;  %v2902_v15 = vpack.c.bf16 %v338_v14, %v337_v13  ;;  %v3301_v16 = vld [vmem:[%s3285_s12 + $0x8] sm:$0xff]  ;;  %v3304_v17 = vld [vmem:[%s3285_s12 + $0x10] sm:$0xff]  ;;  %v3311_v18 = vld [vmem:[%s3285_s12 + $0x18] sm:$0xff] }
  0x1d   : > { %2893 = vmatpush3.bf16.msra.mxu0 %v2890_v6  ;;  %v3314_v19 = vld [vmem:[%s3285_s12 + $0x20] sm:$0xff]  ;;  %v3321_v20 = vld [vmem:[%s3285_s12 + $0x28] sm:$0xff]  ;;  %v3324_v21 = vld [vmem:[%s3285_s12 + $0x30] sm:$0xff] }
  0x1e   : > { %2895 = vmatprep.subr.bf16.mxu0 %v2894_v8  ;;  %v3331_v22 = vld [vmem:[%s3285_s12 + $0x38] sm:$0xff] }
  0x21   : > { %2897 = vmatpush3.bf16.msra.mxu0 %v2894_v8 }
  0x22   : > { %2899 = vmatprep.subr.bf16.mxu0 %v2898_v12 }
  0x25   : > { %2901 = vmatpush3.bf16.msra.mxu0 %v2898_v12 }
  0x26   : > { %2903 = vmatprep.subr.bf16.mxu0 %v2902_v15 }
  0x29   : > { %2905 = vmatpush3.bf16.msra.mxu0 %v2902_v15 }
  0x2c   : > { %2635 = vmatmul.mubr.msk.f32.vlgmr.msra.gmra.mrb[0].mxu0 %vm361_vm0, %v3301_v16 }
  0x2d   : > { %2637 = vmatprep.mubr.msk.f32.mxu0 %vm361_vm0, %v3304_v17 }
  0x30   : > { %2638 = vmatmul.mubr.msk.f32.gmra.mrb[2].mxu0 %vm361_vm0, %v3311_v18 }
  0x31   : > { %2640 = vmatprep.mubr.msk.f32.mxu0 %vm361_vm0, %v3314_v19 }
  0x34   : > { %2641 = vmatmul.mubr.msk.f32.gmra.mrb[4].mxu0 %vm361_vm0, %v3321_v20 }
  0x35   : > { %2643 = vmatprep.mubr.msk.f32.mxu0 %vm361_vm0, %v3324_v21 }
  0x38   : > { %2644 = vmatmul.mubr.msk.f32.gmra.mrb[6].mxu0 %vm361_vm0, %v3331_v22 }
  0x39   : > { %2702 = vmatprep.mubr.msk.f32.mxu0 %vm361_vm0, %v3294_v11 }
  0xff   : > { %v2636_v29 = vpop.f32.mrb[0].mxu0 }
 0x100   : > { %v452_v32 = vpop.f32.mrb[1].mxu0  ;;  %v492_v34 = vadd.f32 %v2636_v29, %v332_v4 }
 0x101   : > { %v491_v33 = vadd.f32 %v452_v32, %v331_v3 }
 0x103   : > { %v2639_v36 = vpop.f32.mrb[2].mxu0  ;;  %2654 = vmatprep.mubr.msk.f32.mxu1 %vm339_vm1, %v491_v33 }
 0x104   : > { %v462_v37 = vpop.f32.mrb[3].mxu0  ;;  %2655 = vmatmul.mubr.msk.f32.vlgmr.msra.gmra.mrb[0].mxu1 %vm339_vm1, %v492_v34  ;;  %v494_v39 = vadd.f32 %v2639_v36, %v334_v7 }
 0x105   : > { %v493_v38 = vadd.f32 %v462_v37, %v333_v5  ;;  %2917 = vmatpush3.bf16.msra.mxu1 %v2914_v28 }
 0x106   : > { %2919 = vmatprep.subr.bf16.mxu1 %v2918_v35 }
 0x107   : > { %v2642_v40 = vpop.f32.mrb[4].mxu0  ;;  %2657 = vmatprep.mubr.msk.f32.mxu1 %vm339_vm1, %v493_v38 }
 0x108   : > { %v472_v41 = vpop.f32.mrb[5].mxu0  ;;  %2658 = vmatmul.mubr.msk.f32.gmra.mrb[2].mxu1 %vm339_vm1, %v494_v39  ;;  %v496_v43 = vadd.f32 %v2642_v40, %v336_v10 }
 0x109   : > { %v495_v42 = vadd.f32 %v472_v41, %v335_v9  ;;  %2921 = vmatpush3.bf16.msra.mxu1 %v2918_v35  ;;  %v2335_v9 = vld [vmem:[%s3857_s5] ss:$0 sm:$0xff] }
 0x10b   : > { %v2645_v44 = vpop.f32.mrb[6].mxu0  ;;  %2660 = vmatprep.mubr.msk.f32.mxu1 %vm339_vm1, %v495_v42 }
 0x10c   : > { %v482_v45 = vpop.f32.mrb[7].mxu0  ;;  %2661 = vmatmul.mubr.msk.f32.gmra.mrb[4].mxu1 %vm339_vm1, %v496_v43  ;;  %v498_v47 = vadd.f32 %v2645_v44, %v338_v14 }
 0x10d   : > { %v497_v46 = vadd.f32 %v482_v45, %v337_v13 }
 0x10f   : > { %2663 = vmatprep.mubr.msk.f32.mxu1 %vm339_vm1, %v497_v46 }
 0x110   : > { %2664 = vmatmul.mubr.msk.f32.gmra.mrb[6].mxu1 %vm339_vm1, %v498_v47 }
 0x1d7   : > { %v2656_v49 = vpop.f32.mrb[0].mxu1 }
 0x1d8   : > { %v606_v50 = vadd.f32 %v2656_v49, %v2326_v48  ;;  %v600_v51 = vpop.f32.mrb[1].mxu1 }
 0x1d9   : > { %v601_v52 = vadd.f32 %v2326_v48, %v600_v51 }
 0x1da   : > { %v640_v55 = vmax.f32 %v606_v50, 0.0 }
 0x1db   : > { %v639_v53 = vmax.f32 %v601_v52, 0.0  ;;  %v2659_v54 = vpop.f32.mrb[2].mxu1 }
 0x1dc   : > { %v616_v56 = vadd.f32 %v2659_v54, %v2326_v48  ;;  %v610_v57 = vpop.f32.mrb[3].mxu1 }
 0x1dd   : > { %v611_v58 = vadd.f32 %v2326_v48, %v610_v57  ;;  %2674 = vmatprep.mubr.msk.f32.mxu1 %vm339_vm1, %v639_v53 }
 0x1de   : > { %2675 = vmatmul.mubr.msk.f32.vlgmr.msra.gmra.mrb[8].mxu1 %vm339_vm1, %v640_v55  ;;  %v642_v61 = vmax.f32 %v616_v56, 0.0 }
 0x1df   : > { %v641_v59 = vmax.f32 %v611_v58, 0.0  ;;  %v2662_v60 = vpop.f32.mrb[4].mxu1 }
 0x1e0   : > { %v626_v62 = vadd.f32 %v2662_v60, %v2326_v48  ;;  %v620_v63 = vpop.f32.mrb[5].mxu1 }
 0x1e1   : > { %v621_v0 = vadd.f32 %v2326_v48, %v620_v63  ;;  %2677 = vmatprep.mubr.msk.f32.mxu1 %vm339_vm1, %v641_v59  ;;  %v2354_v63 = vld [vmem:[%s3854_s2 + $0x30] sm:$0xff] }
 0x1e2   : > { %2678 = vmatmul.mubr.msk.f32.gmra.mrb[10].mxu1 %vm339_vm1, %v642_v61  ;;  %v644_v3 = vmax.f32 %v626_v62, 0.0  ;;  %v2352_v61 = vld [vmem:[%s3854_s2 + $0x20] sm:$0xff]  ;;  %v2353_v62 = vld [vmem:[%s3854_s2 + $0x28] sm:$0xff] }
 0x1e3   : > { %v643_v1 = vmax.f32 %v621_v0, 0.0  ;;  %v2665_v2 = vpop.f32.mrb[6].mxu1 }
 0x1e4   : > { %v636_v4 = vadd.f32 %v2665_v2, %v2326_v48  ;;  %v630_v5 = vpop.f32.mrb[7].mxu1  ;;  %v2355_v2 = vld [vmem:[%s3854_s2 + $0x38] sm:$0xff] }
 0x1e5   : > { %v631_v6 = vadd.f32 %v2326_v48, %v630_v5  ;;  %2680 = vmatprep.mubr.msk.f32.mxu1 %vm339_vm1, %v643_v1  ;;  %v2938_v1 = vpack.c.bf16 %v2353_v62, %v2352_v61 }
 0x1e6   : > { %2681 = vmatmul.mubr.msk.f32.gmra.mrb[12].mxu1 %vm339_vm1, %v644_v3  ;;  %v646_v8 = vmax.f32 %v636_v4, 0.0  ;;  %v2942_v3 = vpack.c.bf16 %v2355_v2, %v2354_v63 }
 0x1e7   : > { %v645_v7 = vmax.f32 %v631_v6, 0.0  ;;  %2939 = vmatprep.subr.bf16.mxu1 %v2938_v1 }
 0x1e8   : > { %2941 = vmatpush3.bf16.msra.mxu1 %v2938_v1 }
 0x1e9   : > { %2683 = vmatprep.mubr.msk.f32.mxu1 %vm339_vm1, %v645_v7  ;;  %2943 = vmatprep.subr.bf16.mxu1 %v2942_v3 }
 0x1ea   : > { %2684 = vmatmul.mubr.msk.f32.gmra.mrb[14].mxu1 %vm339_vm1, %v646_v8 }
 0x1ec   : > { %2945 = vmatpush3.bf16.msra.mxu1 %v2942_v3 }
 0x2b1   : > { %v2676_v10 = vpop.f32.mrb[8].mxu1 }
 0x2b2   : > { %v754_v12 = vadd.f32 %v2676_v10, %v2335_v9  ;;  %v748_v13 = vpop.f32.mrb[9].mxu1  ;;  %v2367_v10 = vld [vmem:[%s3855_s3 + $0x28] sm:$0xff] }
 0x2b3   : > { %v749_v14 = vadd.f32 %v2335_v9, %v748_v13 }
 0x2b4   : > { %v3377_v15 = vmax.f32 %v754_v12, 0.0  ;;  %v2368_v12 = vld [vmem:[%s3855_s3 + $0x30] sm:$0xff] }
 0x2b5   : > { %v3379_v23 = vmax.f32 %v749_v14, 0.0  ;;  %v2679_v24 = vpop.f32.mrb[10].mxu1  ;;  %v2369_v14 = vld [vmem:[%s3855_s3 + $0x38] sm:$0xff] }
 0x2b6   : > { %v764_v25 = vadd.f32 %v2679_v24, %v2335_v9  ;;  %v758_v26 = vpop.f32.mrb[11].mxu1  ;;  %v796_v27 = vsel %vm339_vm1, %v3377_v15, 0.0  ;;  %v2950_v24 = vpack.c.bf16 %v2369_v14, %v2368_v12 }
 0x2b7   : > { %v795_v28 = vsel %vm339_vm1, %v3379_v23, 0.0  ;;  %v759_v29 = vadd.f32 %v2335_v9, %v758_v26  ;;  %v2922_v30 = vpack.c.bf16 %v3377_v15, %v3379_v23 }
 0x2b8   : > { %v3387_v31 = vmax.f32 %v764_v25, 0.0  ;;  %v797_v34 = vadd.f32 %v796_v27, %v795_v28 }
 0x2b9   : > { %v3389_v32 = vmax.f32 %v759_v29, 0.0  ;;  %v2682_v33 = vpop.f32.mrb[12].mxu1  ;;  %2923 = vmatprep.subr.bf16.mxu0 %v2922_v30 }
 0x2ba   : > { %v774_v35 = vadd.f32 %v2682_v33, %v2335_v9  ;;  %v768_v36 = vpop.f32.mrb[13].mxu1  ;;  %2925 = vmatpush3.bf16.msra.mxu0 %v2922_v30  ;;  %v800_v42 = vsel %vm339_vm1, %v3387_v31, 0.0 }
 0x2bb   : > { %v798_v37 = vsel %vm339_vm1, %v3389_v32, 0.0  ;;  %v769_v38 = vadd.f32 %v2335_v9, %v768_v36  ;;  %v2926_v39 = vpack.c.bf16 %v3387_v31, %v3389_v32 }
 0x2bc   : > { %v799_v40 = vadd.f32 %v798_v37, %v797_v34  ;;  %v3395_v41 = vmax.f32 %v774_v35, 0.0 }
 0x2bd   : > { %v3399_v43 = vmax.f32 %v769_v38, 0.0  ;;  %v2685_v44 = vpop.f32.mrb[14].mxu1  ;;  %2927 = vmatprep.subr.bf16.mxu0 %v2926_v39 }
 0x2be   : > { %v801_v45 = vadd.f32 %v800_v42, %v799_v40  ;;  %v784_v46 = vadd.f32 %v2685_v44, %v2335_v9  ;;  %v778_v47 = vpop.f32.mrb[15].mxu1  ;;  %2929 = vmatpush3.bf16.msra.mxu0 %v2926_v39  ;;  %v804_v53 = vsel %vm339_vm1, %v3395_v41, 0.0  ;;  %v2357_v39 = vld [vmem:[%s3856_s4 + $0x1] ss:$0 sm:$0xff] }
 0x2bf   : > { %v802_v48 = vsel %vm339_vm1, %v3399_v43, 0.0  ;;  %v779_v49 = vadd.f32 %v2335_v9, %v778_v47  ;;  %v2930_v50 = vpack.c.bf16 %v3395_v41, %v3399_v43  ;;  %v2366_v9 = vld [vmem:[%s3855_s3 + $0x20] sm:$0xff] }
 0x2c0   : > { %v803_v51 = vadd.f32 %v802_v48, %v801_v45  ;;  %v3405_v52 = vmax.f32 %v784_v46, 0.0  ;;  %v2946_v13 = vpack.c.bf16 %v2367_v10, %v2366_v9 }
 0x2c1   : > { %v3409_v54 = vmax.f32 %v779_v49, 0.0  ;;  %2931 = vmatprep.subr.bf16.mxu0 %v2930_v50 }
 0x2c2   : > { %v805_v55 = vadd.f32 %v804_v53, %v803_v51  ;;  %2933 = vmatpush3.bf16.msra.mxu0 %v2930_v50  ;;  %v808_v59 = vsel %vm339_vm1, %v3405_v52, 0.0 }
 0x2c3   : > { %v806_v56 = vsel %vm339_vm1, %v3409_v54, 0.0  ;;  %v2934_v57 = vpack.c.bf16 %v3405_v52, %v3409_v54 }
 0x2c4   : > { %v807_v58 = vadd.f32 %v806_v56, %v805_v55 }
 0x2c5   : > { %2935 = vmatprep.subr.bf16.mxu0 %v2934_v57 }
 0x2c6   : > { %2937 = vmatpush3.bf16.msra.mxu0 %v2934_v57  ;;  %v809_v60 = vadd.f32 %v808_v59, %v807_v58 }
 0x2c7   : > { %2947 = vmatprep.subr.bf16.mxu0 %v2946_v13 }
 0x2c8   : > { %v810_v0 = vrot.slane %v809_v60, 4 }
 0x2c9   : > { %2703 = vmatmul.mubr.msk.f32.vlgmr.msra.gmra.mrb[8].mxu0 %vm361_vm0, %v3301_v16 }
 0x2ca   : > { %2705 = vmatprep.mubr.msk.f32.mxu0 %vm361_vm0, %v3304_v17  ;;  %v811_v4 = vadd.f32 %v810_v0, %v809_v60  ;;  %2949 = vmatpush3.bf16.msra.mxu0 %v2946_v13  ;;  %v2371_v0 = vld [vmem:[%s3857_s5 + $0x1] ss:$0 sm:$0xff] }
 0x2cb   : > { %2951 = vmatprep.subr.bf16.mxu0 %v2950_v24 }
 0x2cc   : > { %v812_v5 = vrot.slane %v811_v4, 2 }
 0x2cd   : > { %2706 = vmatmul.mubr.msk.f32.gmra.mrb[10].mxu0 %vm361_vm0, %v3311_v18 }
 0x2ce   : > { %2708 = vmatprep.mubr.msk.f32.mxu0 %vm361_vm0, %v3314_v19  ;;  %v813_v6 = vadd.f32 %v812_v5, %v811_v4  ;;  %2953 = vmatpush3.bf16.msra.mxu0 %v2950_v24 }
 0x2d0   : > { %v814_v7 = vrot.slane %v813_v6, 1 }
 0x2d1   : > { %2709 = vmatmul.mubr.msk.f32.gmra.mrb[12].mxu0 %vm361_vm0, %v3321_v20 }
 0x2d2   : > { %2711 = vmatprep.mubr.msk.f32.mxu0 %vm361_vm0, %v3324_v21  ;;  %v815_v8 = vadd.f32 %v814_v7, %v813_v6 }
 0x2d4   : > { %2119 = vrot.lane.b32.xlu0 %v815_v8, %s3171_s13 }
 0x2d5   : > { %2712 = vmatmul.mubr.msk.f32.gmra.mrb[14].mxu0 %vm361_vm0, %v3331_v22 }
 0x39c   : > { %v2704_v25 = vpop.f32.mrb[8].mxu0 }
 0x39d   : > { %v882_v26 = vpop.f32.mrb[9].mxu0  ;;  %v922_v28 = vadd.f32 %v2704_v25, %v3377_v15 }
 0x39e   : > { %v921_v27 = vadd.f32 %v882_v26, %v3379_v23 }
 0x3a0   : > { %v2707_v29 = vpop.f32.mrb[10].mxu0  ;;  %2722 = vmatprep.mubr.msk.f32.mxu1 %vm339_vm1, %v921_v27 }
 0x3a1   : > { %v892_v30 = vpop.f32.mrb[11].mxu0  ;;  %2723 = vmatmul.mubr.msk.f32.vlgmr.msra.gmra.mrb[16].mxu1 %vm339_vm1, %v922_v28  ;;  %v924_v34 = vadd.f32 %v2707_v29, %v3387_v31 }
 0x3a2   : > { %v923_v33 = vadd.f32 %v892_v30, %v3389_v32 }
 0x3a4   : > { %v2710_v35 = vpop.f32.mrb[12].mxu0  ;;  %2725 = vmatprep.mubr.msk.f32.mxu1 %vm339_vm1, %v923_v33 }
 0x3a5   : > { %v902_v36 = vpop.f32.mrb[13].mxu0  ;;  %2726 = vmatmul.mubr.msk.f32.gmra.mrb[18].mxu1 %vm339_vm1, %v924_v34  ;;  %v926_v15 = vadd.f32 %v2710_v35, %v3395_v41 }
 0x3a6   : > { %v925_v23 = vadd.f32 %v902_v36, %v3399_v43 }
 0x3a8   : > { %v2713_v37 = vpop.f32.mrb[14].mxu0  ;;  %2728 = vmatprep.mubr.msk.f32.mxu1 %vm339_vm1, %v925_v23 }
 0x3a9   : > { %v912_v38 = vpop.f32.mrb[15].mxu0  ;;  %2729 = vmatmul.mubr.msk.f32.gmra.mrb[20].mxu1 %vm339_vm1, %v926_v15  ;;  %v928_v31 = vadd.f32 %v2713_v37, %v3405_v52 }
 0x3aa   : > { %v927_v32 = vadd.f32 %v912_v38, %v3409_v54 }
 0x3ac   : > { %2731 = vmatprep.mubr.msk.f32.mxu1 %vm339_vm1, %v927_v32 }
 0x3ad   : > { %2732 = vmatmul.mubr.msk.f32.gmra.mrb[22].mxu1 %vm339_vm1, %v928_v31 }
 0x3ae   : > { %2776 = vmatprep.mubr.msk.f32.mxu1 %vm361_vm0, %v3314_v19 }
 0x474   : > { %v2724_v40 = vpop.f32.mrb[16].mxu1 }
 0x475   : > { %v1038_v41 = vadd.f32 %v2724_v40, %v2357_v39  ;;  %v1032_v42 = vpop.f32.mrb[17].mxu1 }
 0x476   : > { %v1033_v43 = vadd.f32 %v2357_v39, %v1032_v42 }
 0x477   : > { %v1072_v46 = vmax.f32 %v1038_v41, 0.0 }
 0x478   : > { %v1071_v44 = vmax.f32 %v1033_v43, 0.0  ;;  %v2727_v45 = vpop.f32.mrb[18].mxu1 }
 0x479   : > { %v1048_v47 = vadd.f32 %v2727_v45, %v2357_v39  ;;  %v1042_v48 = vpop.f32.mrb[19].mxu1 }
 0x47a   : > { %v1043_v49 = vadd.f32 %v2357_v39, %v1042_v48  ;;  %2742 = vmatprep.mubr.msk.f32.mxu0 %vm339_vm1, %v1071_v44 }
 0x47b   : > { %2743 = vmatmul.mubr.msk.f32.vlgmr.msra.gmra.mrb[16].mxu0 %vm339_vm1, %v1072_v46  ;;  %v1074_v52 = vmax.f32 %v1048_v47, 0.0 }
 0x47c   : > { %v1073_v50 = vmax.f32 %v1043_v49, 0.0  ;;  %v2730_v51 = vpop.f32.mrb[20].mxu1 }
 0x47d   : > { %v1058_v53 = vadd.f32 %v2730_v51, %v2357_v39  ;;  %v1052_v54 = vpop.f32.mrb[21].mxu1 }
 0x47e   : > { %v1053_v55 = vadd.f32 %v2357_v39, %v1052_v54  ;;  %2745 = vmatprep.mubr.msk.f32.mxu0 %vm339_vm1, %v1073_v50 }
 0x47f   : > { %2746 = vmatmul.mubr.msk.f32.gmra.mrb[18].mxu0 %vm339_vm1, %v1074_v52  ;;  %v1076_v58 = vmax.f32 %v1058_v53, 0.0  ;;  %v2388_v52 = vld [vmem:[%s3854_s2 + $0x40] sm:$0xff]  ;;  %v2389_v53 = vld [vmem:[%s3854_s2 + $0x48] sm:$0xff] }
 0x480   : > { %v1075_v56 = vmax.f32 %v1053_v55, 0.0  ;;  %v2733_v57 = vpop.f32.mrb[22].mxu1  ;;  %v2970_v55 = vpack.c.bf16 %v2389_v53, %v2388_v52 }
 0x481   : > { %v1068_v59 = vadd.f32 %v2733_v57, %v2357_v39  ;;  %v1062_v60 = vpop.f32.mrb[23].mxu1 }
 0x482   : > { %v1063_v61 = vadd.f32 %v2357_v39, %v1062_v60  ;;  %2748 = vmatprep.mubr.msk.f32.mxu0 %vm339_vm1, %v1075_v56 }
 0x483   : > { %2749 = vmatmul.mubr.msk.f32.gmra.mrb[20].mxu0 %vm339_vm1, %v1076_v58  ;;  %v1078_v63 = vmax.f32 %v1068_v59, 0.0 }
 0x484   : > { %v1077_v62 = vmax.f32 %v1063_v61, 0.0  ;;  %v2390_v61 = vld [vmem:[%s3854_s2 + $0x50] sm:$0xff] }
 0x486   : > { %2751 = vmatprep.mubr.msk.f32.mxu0 %vm339_vm1, %v1077_v62  ;;  %v2391_v62 = vld [vmem:[%s3854_s2 + $0x58] sm:$0xff] }
 0x487   : > { %2752 = vmatmul.mubr.msk.f32.gmra.mrb[22].mxu0 %vm339_vm1, %v1078_v63  ;;  %v2974_v63 = vpack.c.bf16 %v2391_v62, %v2390_v61 }
 0x488   : > { %2770 = vmatprep.mubr.msk.f32.mxu0 %vm361_vm0, %v3294_v11 }
 0x54e   : > { %v2744_v1 = vpop.f32.mrb[16].mxu0 }
 0x54f   : > { %v1188_v2 = vadd.f32 %v2744_v1, %v2371_v0  ;;  %v1182_v3 = vpop.f32.mrb[17].mxu0  ;;  %v2403_v1 = vld [vmem:[%s3855_s3 + $0x48] sm:$0xff] }
 0x550   : > { %v1183_v4 = vadd.f32 %v2371_v0, %v1182_v3 }
 0x551   : > { %v3489_v5 = vmax.f32 %v1188_v2, 0.0 }
 0x552   : > { %v3491_v6 = vmax.f32 %v1183_v4, 0.0  ;;  %v2747_v7 = vpop.f32.mrb[18].mxu0 }
 0x553   : > { %v1198_v8 = vadd.f32 %v2747_v7, %v2371_v0  ;;  %v1192_v9 = vpop.f32.mrb[19].mxu0  ;;  %v1230_v10 = vsel %vm339_vm1, %v3489_v5, 0.0 }
 0x554   : > { %v1229_v12 = vsel %vm339_vm1, %v3491_v6, 0.0  ;;  %v2954_v13 = vpack.c.bf16 %v3489_v5, %v3491_v6  ;;  %v1193_v14 = vadd.f32 %v2371_v0, %v1192_v9 }
 0x555   : > { %v3499_v24 = vmax.f32 %v1198_v8, 0.0  ;;  %v1231_v27 = vadd.f32 %v1230_v10, %v1229_v12 }
 0x556   : > { %v3501_v25 = vmax.f32 %v1193_v14, 0.0  ;;  %v2750_v26 = vpop.f32.mrb[20].mxu0  ;;  %2955 = vmatprep.subr.bf16.mxu0 %v2954_v13  ;;  %3048 = vmatprep.subr.bf16.mxu1 %v2954_v13 }
 0x557   : > { %v1208_v28 = vadd.f32 %v2750_v26, %v2371_v0  ;;  %v1202_v29 = vpop.f32.mrb[21].mxu0  ;;  %2957 = vmatpush3.bf16.msra.mxu0 %v2954_v13  ;;  %3052 = vmatpush3.bf16.msra.mxu1 %v2954_v13  ;;  %v1234_v23 = vsel %vm339_vm1, %v3499_v24, 0.0 }
 0x558   : > { %v1232_v30 = vsel %vm339_vm1, %v3501_v25, 0.0  ;;  %v2958_v33 = vpack.c.bf16 %v3499_v24, %v3501_v25  ;;  %v1203_v34 = vadd.f32 %v2371_v0, %v1202_v29 }
 0x559   : > { %v1233_v35 = vadd.f32 %v1232_v30, %v1231_v27  ;;  %v3507_v36 = vmax.f32 %v1208_v28, 0.0  ;;  %v2405_v30 = vld [vmem:[%s3855_s3 + $0x58] sm:$0xff] }
 0x55a   : > { %v3511_v15 = vmax.f32 %v1203_v34, 0.0  ;;  %v2753_v37 = vpop.f32.mrb[22].mxu0  ;;  %2959 = vmatprep.subr.bf16.mxu0 %v2958_v33  ;;  %3049 = vmatprep.subr.bf16.mxu1 %v2958_v33  ;;  %v2393_v34 = vld [vmem:[%s3856_s4 + $0x2] ss:$0 sm:$0xff] }
 0x55b   : > { %v1235_v38 = vadd.f32 %v1234_v23, %v1233_v35  ;;  %v1218_v32 = vadd.f32 %v2753_v37, %v2371_v0  ;;  %v1212_v31 = vpop.f32.mrb[23].mxu0  ;;  %2961 = vmatpush3.bf16.msra.mxu0 %v2958_v33  ;;  %3053 = vmatpush3.bf16.msra.mxu1 %v2958_v33  ;;  %v1238_v44 = vsel %vm339_vm1, %v3507_v36, 0.0 }
 0x55c   : > { %v1236_v39 = vsel %vm339_vm1, %v3511_v15, 0.0  ;;  %v2962_v40 = vpack.c.bf16 %v3507_v36, %v3511_v15  ;;  %v1213_v41 = vadd.f32 %v2371_v0, %v1212_v31  ;;  %v2402_v0 = vld [vmem:[%s3855_s3 + $0x40] sm:$0xff] }
 0x55d   : > { %v1237_v42 = vadd.f32 %v1236_v39, %v1235_v38  ;;  %v3517_v43 = vmax.f32 %v1218_v32, 0.0  ;;  %v2978_v2 = vpack.c.bf16 %v2403_v1, %v2402_v0 }
 0x55e   : > { %v3521_v45 = vmax.f32 %v1213_v41, 0.0  ;;  %2963 = vmatprep.subr.bf16.mxu0 %v2962_v40  ;;  %3050 = vmatprep.subr.bf16.mxu1 %v2962_v40 }
 0x55f   : > { %v1239_v46 = vadd.f32 %v1238_v44, %v1237_v42  ;;  %2965 = vmatpush3.bf16.msra.mxu0 %v2962_v40  ;;  %3054 = vmatpush3.bf16.msra.mxu1 %v2962_v40  ;;  %v1242_v50 = vsel %vm339_vm1, %v3517_v43, 0.0 }
 0x560   : > { %v1240_v47 = vsel %vm339_vm1, %v3521_v45, 0.0  ;;  %v2966_v48 = vpack.c.bf16 %v3517_v43, %v3521_v45 }
 0x561   : > { %v1241_v49 = vadd.f32 %v1240_v47, %v1239_v46 }
 0x562   : > { %2967 = vmatprep.subr.bf16.mxu0 %v2966_v48  ;;  %3051 = vmatprep.subr.bf16.mxu1 %v2966_v48 }
 0x563   : > { %v1243_v51 = vadd.f32 %v1242_v50, %v1241_v49  ;;  %2969 = vmatpush3.bf16.msra.mxu0 %v2966_v48  ;;  %3055 = vmatpush3.bf16.msra.mxu1 %v2966_v48 }
 0x564   : > { %2971 = vmatprep.subr.bf16.mxu0 %v2970_v55  ;;  %2979 = vmatprep.subr.bf16.mxu1 %v2978_v2 }
 0x565   : > { %v1244_v54 = vrot.slane %v1243_v51, 4 }
 0x566   : > { %2771 = vmatmul.mubr.msk.f32.vlgmr.msra.gmra.mrb[24].mxu0 %vm361_vm0, %v3301_v16  ;;  %2777 = vmatmul.mubr.msk.f32.vlgmr.msra.gmra.mrb[24].mxu1 %vm361_vm0, %v3321_v20 }
 0x567   : > { %2773 = vmatprep.mubr.msk.f32.mxu0 %vm361_vm0, %v3304_v17  ;;  %2779 = vmatprep.mubr.msk.f32.mxu1 %vm361_vm0, %v3324_v21  ;;  %v1245_v56 = vadd.f32 %v1244_v54, %v1243_v51  ;;  %v2407_v54 = vld [vmem:[%s3857_s5 + $0x2] ss:$0 sm:$0xff] }
 0x568   : > { %2973 = vmatpush3.bf16.msra.mxu0 %v2970_v55  ;;  %2981 = vmatpush3.bf16.msra.mxu1 %v2978_v2 }
 0x569   : > { %v1246_v57 = vrot.slane %v1245_v56, 2  ;;  %2975 = vmatprep.subr.bf16.mxu0 %v2974_v63 }
 0x56a   : > { %2774 = vmatmul.mubr.msk.f32.gmra.mrb[26].mxu0 %vm361_vm0, %v3311_v18  ;;  %2780 = vmatmul.mubr.msk.f32.gmra.mrb[26].mxu1 %vm361_vm0, %v3331_v22 }
 0x56b   : > { %v1247_v58 = vadd.f32 %v1246_v57, %v1245_v56 }
 0x56c   : > { %2977 = vmatpush3.bf16.msra.mxu0 %v2974_v63 }
 0x56d   : > { %v1248_v59 = vrot.slane %v1247_v58, 1 }
 0x56f   : > { %v1249_v60 = vadd.f32 %v1248_v59, %v1247_v58 }
 0x571   : > { %2123 = vrot.lane.b32.xlu0 %v1249_v60, %s3172_s21 }
 0x639   : > { %v2772_v3 = vpop.f32.mrb[24].mxu0  ;;  %v2778_v4 = vpop.f32.mrb[24].mxu1 }
 0x63a   : > { %v1316_v7 = vpop.f32.mrb[25].mxu0  ;;  %v1336_v8 = vpop.f32.mrb[25].mxu1  ;;  %v1356_v10 = vadd.f32 %v2772_v3, %v3489_v5  ;;  %v1360_v5 = vadd.f32 %v2778_v4, %v3507_v36 }
 0x63b   : > { %v1355_v9 = vadd.f32 %v1316_v7, %v3491_v6  ;;  %v1359_v29 = vadd.f32 %v1336_v8, %v3511_v15 }
 0x63d   : > { %v2775_v12 = vpop.f32.mrb[26].mxu0  ;;  %v2781_v13 = vpop.f32.mrb[26].mxu1  ;;  %2790 = vmatprep.mubr.msk.f32.mxu0 %vm339_vm1, %v1355_v9 }
 0x63e   : > { %v1326_v14 = vpop.f32.mrb[27].mxu0  ;;  %v1346_v26 = vpop.f32.mrb[27].mxu1  ;;  %2791 = vmatmul.mubr.msk.f32.vlgmr.msra.gmra.mrb[28].mxu0 %vm339_vm1, %v1356_v10  ;;  %v1358_v28 = vadd.f32 %v2775_v12, %v3499_v24  ;;  %v2404_v24 = vld [vmem:[%s3855_s3 + $0x50] sm:$0xff] }
 0x63f   : > { %v1357_v27 = vadd.f32 %v1326_v14, %v3501_v25  ;;  %v1361_v6 = vadd.f32 %v1346_v26, %v3521_v45  ;;  %v1362_v25 = vadd.f32 %v2781_v13, %v3517_v43  ;;  %v2982_v33 = vpack.c.bf16 %v2405_v30, %v2404_v24 }
 0x641   : > { %2793 = vmatprep.mubr.msk.f32.mxu0 %vm339_vm1, %v1357_v27  ;;  %2983 = vmatprep.subr.bf16.mxu1 %v2982_v33 }
 0x642   : > { %2794 = vmatmul.mubr.msk.f32.gmra.mrb[30].mxu0 %vm339_vm1, %v1358_v28  ;;  %2985 = vmatpush3.bf16.msra.mxu1 %v2982_v33 }
 0x643   : > { %2796 = vmatprep.mubr.msk.f32.mxu0 %vm339_vm1, %v1359_v29 }
 0x646   : > { %2797 = vmatmul.mubr.msk.f32.gmra.mrb[32].mxu0 %vm339_vm1, %v1360_v5 }
 0x647   : > { %2799 = vmatprep.mubr.msk.f32.mxu0 %vm339_vm1, %v1361_v6 }
 0x64a   : > { %2800 = vmatmul.mubr.msk.f32.gmra.mrb[34].mxu0 %vm339_vm1, %v1362_v25 }
 0x64b   : > { %2838 = vmatprep.mubr.msk.f32.mxu0 %vm361_vm0, %v3294_v11 }
 0x711   : > { %v2792_v35 = vpop.f32.mrb[28].mxu0 }
 0x712   : > { %v1472_v36 = vadd.f32 %v2792_v35, %v2393_v34  ;;  %v1466_v23 = vpop.f32.mrb[29].mxu0 }
 0x713   : > { %v1467_v15 = vadd.f32 %v2393_v34, %v1466_v23 }
 0x714   : > { %v1506_v38 = vmax.f32 %v1472_v36, 0.0 }
 0x715   : > { %v1505_v11 = vmax.f32 %v1467_v15, 0.0  ;;  %v2795_v37 = vpop.f32.mrb[30].mxu0 }
 0x716   : > { %v1482_v32 = vadd.f32 %v2795_v37, %v2393_v34  ;;  %v1476_v31 = vpop.f32.mrb[31].mxu0 }
 0x717   : > { %v1477_v39 = vadd.f32 %v2393_v34, %v1476_v31  ;;  %2810 = vmatprep.mubr.msk.f32.mxu1 %vm339_vm1, %v1505_v11 }
 0x718   : > { %2811 = vmatmul.mubr.msk.f32.vlgmr.msra.gmra.mrb[28].mxu1 %vm339_vm1, %v1506_v38  ;;  %v1508_v42 = vmax.f32 %v1482_v32, 0.0 }
 0x719   : > { %v1507_v40 = vmax.f32 %v1477_v39, 0.0  ;;  %v2798_v41 = vpop.f32.mrb[32].mxu0 }
 0x71a   : > { %v1492_v43 = vadd.f32 %v2798_v41, %v2393_v34  ;;  %v1486_v44 = vpop.f32.mrb[33].mxu0  ;;  %v2424_v41 = vld [vmem:[%s3854_s2 + $0x60] sm:$0xff] }
 0x71b   : > { %v1487_v45 = vadd.f32 %v2393_v34, %v1486_v44  ;;  %2813 = vmatprep.mubr.msk.f32.mxu1 %vm339_vm1, %v1507_v40 }
 0x71c   : > { %2814 = vmatmul.mubr.msk.f32.gmra.mrb[30].mxu1 %vm339_vm1, %v1508_v42  ;;  %v1510_v48 = vmax.f32 %v1492_v43, 0.0  ;;  %v2425_v42 = vld [vmem:[%s3854_s2 + $0x68] sm:$0xff]  ;;  %v2426_v43 = vld [vmem:[%s3854_s2 + $0x70] sm:$0xff] }
 0x71d   : > { %v1509_v46 = vmax.f32 %v1487_v45, 0.0  ;;  %v2801_v47 = vpop.f32.mrb[34].mxu0  ;;  %v3002_v45 = vpack.c.bf16 %v2425_v42, %v2424_v41  ;;  %v2137_v41 = vld [vmem:[%s3858_s6 + $0x18] sm:$0xff] }
 0x71e   : > { %v1502_v49 = vadd.f32 %v2801_v47, %v2393_v34  ;;  %v1496_v50 = vpop.f32.mrb[35].mxu0 }
 0x71f   : > { %v1497_v51 = vadd.f32 %v2393_v34, %v1496_v50  ;;  %2816 = vmatprep.mubr.msk.f32.mxu1 %vm339_vm1, %v1509_v46  ;;  %v2427_v46 = vld [vmem:[%s3854_s2 + $0x78] sm:$0xff]  ;;  %3003 = vmatprep.subr.bf16.mxu1 %v3002_v45 }
 0x720   : > { %2817 = vmatmul.mubr.msk.f32.gmra.mrb[32].mxu1 %vm339_vm1, %v1510_v48  ;;  %v1512_v53 = vmax.f32 %v1502_v49, 0.0  ;;  %v3006_v47 = vpack.c.bf16 %v2427_v46, %v2426_v43  ;;  %v2138_v43 = vld [vmem:[%s3858_s6 + $0x20] sm:$0xff]  ;;  %v2140_v46 = vld [vmem:[%s3858_s6 + $0x30] sm:$0xff] }
 0x721   : > { %v1511_v52 = vmax.f32 %v1497_v51, 0.0  ;;  %3005 = vmatpush3.bf16.msra.mxu1 %v3002_v45 }
 0x722   : > { %3007 = vmatprep.subr.bf16.mxu1 %v3006_v47 }
 0x723   : > { %2819 = vmatprep.mubr.msk.f32.mxu1 %vm339_vm1, %v1511_v52 }
 0x724   : > { %2820 = vmatmul.mubr.msk.f32.gmra.mrb[34].mxu1 %vm339_vm1, %v1512_v53 }
 0x725   : > { %3009 = vmatpush3.bf16.msra.mxu1 %v3006_v47  ;;  %v2141_v47 = vld [vmem:[%s3858_s6 + $0x38] sm:$0xff] }
 0x7eb   : > { %v2812_v55 = vpop.f32.mrb[28].mxu1 }
 0x7ec   : > { %v1622_v56 = vadd.f32 %v2812_v55, %v2407_v54  ;;  %v1616_v57 = vpop.f32.mrb[29].mxu1 }
 0x7ed   : > { %v1617_v58 = vadd.f32 %v2407_v54, %v1616_v57 }
 0x7ee   : > { %v3597_v59 = vmax.f32 %v1622_v56, 0.0 }
 0x7ef   : > { %v3599_v60 = vmax.f32 %v1617_v58, 0.0  ;;  %v2815_v61 = vpop.f32.mrb[30].mxu1 }
 0x7f0   : > { %v1632_v62 = vadd.f32 %v2815_v61, %v2407_v54  ;;  %v1626_v63 = vpop.f32.mrb[31].mxu1  ;;  %v1664_v0 = vsel %vm339_vm1, %v3597_v59, 0.0 }
 0x7f1   : > { %v1663_v1 = vsel %vm339_vm1, %v3599_v60, 0.0  ;;  %v1627_v2 = vadd.f32 %v2407_v54, %v1626_v63  ;;  %v2986_v3 = vpack.c.bf16 %v3597_v59, %v3599_v60 }
 0x7f2   : > { %v3607_v4 = vmax.f32 %v1632_v62, 0.0  ;;  %v1665_v9 = vadd.f32 %v1664_v0, %v1663_v1 }
 0x7f3   : > { %v3609_v7 = vmax.f32 %v1627_v2, 0.0  ;;  %v2818_v8 = vpop.f32.mrb[32].mxu1  ;;  %2987 = vmatprep.subr.bf16.mxu0 %v2986_v3 }
 0x7f4   : > { %v1642_v10 = vadd.f32 %v2818_v8, %v2407_v54  ;;  %v1636_v12 = vpop.f32.mrb[33].mxu1  ;;  %2989 = vmatpush3.bf16.msra.mxu0 %v2986_v3  ;;  %v1668_v29 = vsel %vm339_vm1, %v3607_v4, 0.0  ;;  %v3174_v8 = vmov 0.0|0.0  }
 0x7f5   : > { %v1666_v13 = vsel %vm339_vm1, %v3609_v7, 0.0  ;;  %v1637_v14 = vadd.f32 %v2407_v54, %v1636_v12  ;;  %v2990_v26 = vpack.c.bf16 %v3607_v4, %v3609_v7  ;;  %3018 = vmatprep.subr.bf16.mxu1 %v3174_v8 }
 0x7f6   : > { %v1667_v27 = vadd.f32 %v1666_v13, %v1665_v9  ;;  %v3615_v28 = vmax.f32 %v1642_v10, 0.0  ;;  %v2429_v10 = vld [vmem:[%s3856_s4 + $0x3] ss:$0 sm:$0xff] }
 0x7f7   : > { %v3619_v5 = vmax.f32 %v1637_v14, 0.0  ;;  %v2821_v6 = vpop.f32.mrb[34].mxu1  ;;  %2991 = vmatprep.subr.bf16.mxu0 %v2990_v26 }
 0x7f8   : > { %v1669_v25 = vadd.f32 %v1668_v29, %v1667_v27  ;;  %v1652_v24 = vadd.f32 %v2821_v6, %v2407_v54  ;;  %v1646_v30 = vpop.f32.mrb[35].mxu1  ;;  %2993 = vmatpush3.bf16.msra.mxu0 %v2990_v26  ;;  %v1672_v15 = vsel %vm339_vm1, %v3615_v28, 0.0 }
 0x7f9   : > { %v1670_v33 = vsel %vm339_vm1, %v3619_v5, 0.0  ;;  %v1647_v34 = vadd.f32 %v2407_v54, %v1646_v30  ;;  %v2994_v35 = vpack.c.bf16 %v3615_v28, %v3619_v5 }
 0x7fa   : > { %v1671_v36 = vadd.f32 %v1670_v33, %v1669_v25  ;;  %v3625_v23 = vmax.f32 %v1652_v24, 0.0 }
 0x7fb   : > { %v3629_v11 = vmax.f32 %v1647_v34, 0.0  ;;  %2995 = vmatprep.subr.bf16.mxu0 %v2994_v35 }
 0x7fc   : > { %v1673_v37 = vadd.f32 %v1672_v15, %v1671_v36  ;;  %2997 = vmatpush3.bf16.msra.mxu0 %v2994_v35  ;;  %v1676_v39 = vsel %vm339_vm1, %v3625_v23, 0.0 }
 0x7fd   : > { %v1674_v38 = vsel %vm339_vm1, %v3629_v11, 0.0  ;;  %v2998_v32 = vpack.c.bf16 %v3625_v23, %v3629_v11 }
 0x7fe   : > { %v1675_v31 = vadd.f32 %v1674_v38, %v1673_v37 }
 0x7ff   : > { %2999 = vmatprep.subr.bf16.mxu0 %v2998_v32 }
 0x800   : > { %3001 = vmatpush3.bf16.msra.mxu0 %v2998_v32  ;;  %v1677_v40 = vadd.f32 %v1676_v39, %v1675_v31 }
 0x802   : > { %v1678_v44 = vrot.slane %v1677_v40, 4 }
 0x803   : > { %2839 = vmatmul.mubr.msk.f32.vlgmr.msra.gmra.mrb[36].mxu0 %vm361_vm0, %v3301_v16 }
 0x804   : > { %2841 = vmatprep.mubr.msk.f32.mxu0 %vm361_vm0, %v3304_v17  ;;  %v1679_v48 = vadd.f32 %v1678_v44, %v1677_v40  ;;  %v2438_v17 = vld [vmem:[%s3855_s3 + $0x60] sm:$0xff]  ;;  %v2136_v40 = vld [vmem:[%s3858_s6 + $0x10] sm:$0xff]  ;;  %v2139_v44 = vld [vmem:[%s3858_s6 + $0x28] sm:$0xff] }
 0x805   : > { %v3022_v42 = vpack.c.bf16 %v2137_v41, %v2136_v40  ;;  %v3025_v45 = vpack.c.bf16 %v2139_v44, %v2138_v43 }
 0x806   : > { %v1680_v49 = vrot.slane %v1679_v48, 2 }
 0x807   : > { %2842 = vmatmul.mubr.msk.f32.gmra.mrb[38].mxu0 %vm361_vm0, %v3311_v18  ;;  %v2439_v18 = vld [vmem:[%s3855_s3 + $0x68] sm:$0xff] }
 0x808   : > { %2844 = vmatprep.mubr.msk.f32.mxu0 %vm361_vm0, %v3314_v19  ;;  %v1681_v50 = vadd.f32 %v1680_v49, %v1679_v48  ;;  %v2440_v19 = vld [vmem:[%s3855_s3 + $0x70] sm:$0xff]  ;;  %v3028_v48 = vpack.c.bf16 %v2141_v47, %v2140_v46  ;;  %v2142_v49 = vld [vmem:[%s3858_s6 + $0x40] sm:$0xff] }
 0x80a   : > { %v1682_v51 = vrot.slane %v1681_v50, 1 }
 0x80b   : > { %2845 = vmatmul.mubr.msk.f32.gmra.mrb[40].mxu0 %vm361_vm0, %v3321_v20  ;;  %v3010_v20 = vpack.c.bf16 %v2439_v18, %v2438_v17  ;;  %v2145_v17 = vld [vmem:[%s3858_s6 + $0x58] sm:$0xff] }
 0x80c   : > { %2847 = vmatprep.mubr.msk.f32.mxu0 %vm361_vm0, %v3324_v21  ;;  %v1683_v16 = vadd.f32 %v1682_v51, %v1681_v50  ;;  %v2441_v21 = vld [vmem:[%s3855_s3 + $0x78] sm:$0xff]  ;;  %v2143_v50 = vld [vmem:[%s3858_s6 + $0x48] sm:$0xff] }
 0x80d   : > { %v3014_v52 = vpack.c.bf16 %v2441_v21, %v2440_v19  ;;  %3011 = vmatprep.subr.bf16.mxu0 %v3010_v20  ;;  %v3031_v51 = vpack.c.bf16 %v2143_v50, %v2142_v49  ;;  %v2146_v19 = vld [vmem:[%s3858_s6 + $0x60] sm:$0xff] }
 0x80e   : > { %2127 = vrot.lane.b32.xlu1 %v1683_v16, %s3173_s22  ;;  %3013 = vmatpush3.bf16.msra.mxu0 %v3010_v20  ;;  %v2144_v16 = vld [vmem:[%s3858_s6 + $0x50] sm:$0xff]  ;;  %v2147_v20 = vld [vmem:[%s3858_s6 + $0x68] sm:$0xff]  ;;  %s3810_s22 = scalar_lea.hbm %s3860_s8, %s2453_s17 }
 0x80f   : > { %2848 = vmatmul.mubr.msk.f32.gmra.mrb[42].mxu0 %vm361_vm0, %v3331_v22  ;;  %3015 = vmatprep.subr.bf16.mxu0 %v3014_v52  ;;  %v3034_v18 = vpack.c.bf16 %v2145_v17, %v2144_v16  ;;  %v3037_v21 = vpack.c.bf16 %v2147_v20, %v2146_v19 }
 0x812   : > { %3017 = vmatpush3.bf16.msra.mxu0 %v3014_v52  ;;  %v2148_v52 = vld [vmem:[%s3858_s6 + $0x70] sm:$0xff] }
 0x8d6   : > { %v2840_v22 = vpop.f32.mrb[36].mxu0 }
 0x8d7   : > { %v1750_v53 = vpop.f32.mrb[37].mxu0  ;;  %v1790_v55 = vadd.f32 %v2840_v22, %v3597_v59  ;;  %v2149_v22 = vld [vmem:[%s3858_s6 + $0x78] sm:$0xff] }
 0x8d8   : > { %v1789_v54 = vadd.f32 %v1750_v53, %v3599_v60  ;;  %v3040_v53 = vpack.c.bf16 %v2149_v22, %v2148_v52 }
 0x8da   : > { %v2843_v56 = vpop.f32.mrb[38].mxu0  ;;  %2858 = vmatprep.mubr.msk.f32.mxu1 %vm339_vm1, %v1789_v54  ;;  %v2150_v54 = vld [vmem:[%s3858_s6 + $0x80] sm:$0xff] }
 0x8db   : > { %v1760_v57 = vpop.f32.mrb[39].mxu0  ;;  %2859 = vmatmul.mubr.msk.f32.vlgmr.msra.gmra.mrb[36].mxu1 %vm339_vm1, %v1790_v55  ;;  %v1792_v61 = vadd.f32 %v2843_v56, %v3607_v4  ;;  %v2134_v4 = vld [vmem:[%s3858_s6] sm:$0xff]  ;;  %v2151_v55 = vld [vmem:[%s3858_s6 + $0x88] sm:$0xff] }
 0x8dc   : > { %v1791_v58 = vadd.f32 %v1760_v57, %v3609_v7  ;;  %v2135_v7 = vld [vmem:[%s3858_s6 + $0x8] sm:$0xff]  ;;  %v3043_v56 = vpack.c.bf16 %v2151_v55, %v2150_v54  ;;  %v2152_v57 = vld [vmem:[%s3858_s6 + $0x90] sm:$0xff] }
 0x8dd   : > { %v3019_v9 = vpack.c.bf16 %v2135_v7, %v2134_v4  ;;  %v3102_v4 = vld [vmem:[%s3280_s25 + $0x18] sm:$0xff] }
 0x8de   : > { %v2846_v62 = vpop.f32.mrb[40].mxu0  ;;  %2861 = vmatprep.mubr.msk.f32.mxu1 %vm339_vm1, %v1791_v58  ;;  %v2153_v58 = vld [vmem:[%s3858_s6 + $0x98] sm:$0xff]  ;;  %v345_v7 = vsel %vm339_vm1, %v3102_v4, 0.0 }
 0x8df   : > { %v1770_v63 = vpop.f32.mrb[41].mxu0  ;;  %2862 = vmatmul.mubr.msk.f32.gmra.mrb[38].mxu1 %vm339_vm1, %v1792_v61  ;;  %v1794_v59 = vadd.f32 %v2846_v62, %v3615_v28  ;;  %v3046_v61 = vpack.c.bf16 %v2153_v58, %v2152_v57  ;;  %v3099_v62 = vld [vmem:[%s3280_s25] sm:$0xff] }
 0x8e0   : > { %v1793_v60 = vadd.f32 %v1770_v63, %v3619_v5  ;;  %3020 = vmatpush1.bf16.msra.mxu1 %v3019_v9  ;;  %v340_v63 = vsel %vm339_vm1, %v3099_v62, 0.0 }
 0x8e1   : > { %3021 = vmatprep.subr.bf16.mxu1 %v3174_v8 }
 0x8e2   : > { %v2849_v0 = vpop.f32.mrb[42].mxu0  ;;  %2864 = vmatprep.mubr.msk.f32.mxu1 %vm339_vm1, %v1793_v60  ;;  %v3100_v60 = vld [vmem:[%s3280_s25 + $0x8] sm:$0xff] }
 0x8e3   : > { %v1780_v1 = vpop.f32.mrb[43].mxu0  ;;  %2865 = vmatmul.mubr.msk.f32.gmra.mrb[40].mxu1 %vm339_vm1, %v1794_v59  ;;  %v1796_v3 = vadd.f32 %v2849_v0, %v3625_v23  ;;  %v341_v59 = vsel %vm339_vm1, %v3100_v60, 0.0 }
 0x8e4   : > { %v1795_v2 = vadd.f32 %v1780_v1, %v3629_v11  ;;  %3023 = vmatpush1.bf16.msra.mxu1 %v3022_v42  ;;  %v342_v0 = vadd.f32 %v341_v59, %v340_v63  ;;  %v3101_v1 = vld [vmem:[%s3280_s25 + $0x10] sm:$0xff] }
 0x8e5   : > { %3024 = vmatprep.subr.bf16.mxu1 %v3174_v8 }
 0x8e6   : > { %2867 = vmatprep.mubr.msk.f32.mxu1 %vm339_vm1, %v1795_v2  ;;  %v343_v2 = vsel %vm339_vm1, %v3101_v1, 0.0 }
 0x8e7   : > { %2868 = vmatmul.mubr.msk.f32.gmra.mrb[42].mxu1 %vm339_vm1, %v1796_v3  ;;  %v344_v3 = vadd.f32 %v343_v2, %v342_v0  ;;  %v2120_v2 = vpop.permute.xlu0 %2119 }
 0x8e8   : > { %3026 = vmatpush1.bf16.msra.mxu1 %v3025_v45 }
 0x8e9   : > { %3027 = vmatprep.subr.bf16.mxu1 %v3174_v8  ;;  %v346_v9 = vadd.f32 %v345_v7, %v344_v3 }
 0x8ec   : > { %3029 = vmatpush1.bf16.msra.mxu1 %v3028_v48 }
 0x8ed   : > { %3030 = vmatprep.subr.bf16.mxu1 %v3174_v8 }
 0x8f0   : > { %3032 = vmatpush1.bf16.msra.mxu1 %v3031_v51 }
 0x8f1   : > { %3033 = vmatprep.subr.bf16.mxu1 %v3174_v8 }
 0x8f4   : > { %3035 = vmatpush1.bf16.msra.mxu1 %v3034_v18 }
 0x8f5   : > { %3036 = vmatprep.subr.bf16.mxu1 %v3174_v8 }
 0x8f8   : > { %3038 = vmatpush1.bf16.msra.mxu1 %v3037_v21 }
 0x8f9   : > { %3039 = vmatprep.subr.bf16.mxu1 %v3174_v8 }
 0x8fc   : > { %3041 = vmatpush1.bf16.msra.mxu1 %v3040_v53 }
 0x8fd   : > { %3042 = vmatprep.subr.bf16.mxu1 %v3174_v8 }
 0x900   : > { %3044 = vmatpush1.bf16.msra.mxu1 %v3043_v56 }
 0x901   : > { %3045 = vmatprep.subr.bf16.mxu1 %v3174_v8  ;;  %v3103_v8 = vld [vmem:[%s3280_s25 + $0x20] sm:$0xff] }
 0x904   : > { %3047 = vmatpush1.bf16.msra.mxu1 %v3046_v61 }
 0x9ae   : > { %v2860_v12 = vpop.f32.mrb[36].mxu1 }
 0x9af   : > { %v1906_v13 = vadd.f32 %v2860_v12, %v2429_v10  ;;  %v1900_v14 = vpop.f32.mrb[37].mxu1 }
 0x9b0   : > { %v1901_v26 = vadd.f32 %v2429_v10, %v1900_v14 }
 0x9b1   : > { %v1940_v29 = vmax.f32 %v1906_v13, 0.0  ;;  %v3104_v13 = vld [vmem:[%s3280_s25 + $0x28] sm:$0xff] }
 0x9b2   : > { %v1939_v27 = vmax.f32 %v1901_v26, 0.0  ;;  %v2863_v28 = vpop.f32.mrb[38].mxu1  ;;  %v349_v14 = vsel %vm339_vm1, %v3104_v13, 0.0 }
 0x9b3   : > { %v1916_v5 = vadd.f32 %v2863_v28, %v2429_v10  ;;  %v1910_v6 = vpop.f32.mrb[39].mxu1 }
 0x9b4   : > { %v1911_v25 = vadd.f32 %v2429_v10, %v1910_v6  ;;  %2878 = vmatprep.mubr.msk.f32.mxu0 %vm339_vm1, %v1939_v27  ;;  %v3105_v27 = vld [vmem:[%s3280_s25 + $0x30] sm:$0xff] }
 0x9b5   : > { %2879 = vmatmul.mubr.msk.f32.vlgmr.msra.gmra.mrb[44].mxu0 %vm339_vm1, %v1940_v29  ;;  %v1942_v33 = vmax.f32 %v1916_v5, 0.0  ;;  %v351_v28 = vsel %vm339_vm1, %v3105_v27, 0.0  ;;  %v2443_v29 = vld [vmem:[%s3857_s5 + $0x3] ss:$0 sm:$0xff]  ;;  %v2154_v27 = vld [vmem:[%s3859_s7] sm:$0x1] }
 0x9b6   : > { %v1941_v24 = vmax.f32 %v1911_v25, 0.0  ;;  %v2866_v30 = vpop.f32.mrb[40].mxu1 }
 0x9b7   : > { %v1926_v34 = vadd.f32 %v2866_v30, %v2429_v10  ;;  %v1920_v35 = vpop.f32.mrb[41].mxu1  ;;  %v3106_v30 = vld [vmem:[%s3280_s25 + $0x38] sm:$0xff]  ;;  %s311_s25 = sand.u32 1, %s3161_s28  }
 0x9b8   : > { %v1921_v36 = vadd.f32 %v2429_v10, %v1920_v35  ;;  %2881 = vmatprep.mubr.msk.f32.mxu0 %vm339_vm1, %v1941_v24  ;;  %s312_s18 = scalar_lea.vmem [#allocation2], %s311_s25  ;;  %s2231_s23 = scalar_lea.sflag [#allocation3], %s311_s25 }
 0x9b9   : > { %2882 = vmatmul.mubr.msk.f32.gmra.mrb[46].mxu0 %vm339_vm1, %v1942_v33  ;;  %v1944_v11 = vmax.f32 %v1926_v34, 0.0  ;;  %v353_v33 = vsel %vm339_vm1, %v3106_v30, 0.0  ;;  %s2243_s19 = sshll.u32 %s312_s18, 4  ;;  %s3812_s19 = int_to_ptr.vmem [resolvable:$true] %s2243_s19 }
 0x9ba   : > { %v1943_v23 = vmax.f32 %v1921_v36, 0.0  ;;  %v2869_v15 = vpop.f32.mrb[42].mxu1  ;;  %s3107_s24 = scalar_lea.vmem %s3812_s19, 16  ;;  %p3114_p0 = scmp.lt.s32.totalorder %s3812_s19, %s3112_s26 }
 0x9bb   : > { %v1936_v37 = vadd.f32 %v2869_v15, %v2429_v10  ;;  %v1930_v38 = vpop.f32.mrb[43].mxu1  ;;  %p3108_p11 = scmp.ne.s32.totalorder %s3812_s19, %s3107_s24  ;;  %p3115_p1 = scmp.lt.s32.totalorder %s3113_s10, %s3107_s24 }
 0x9bc   : > { %v1931_v32 = vadd.f32 %v2429_v10, %v1930_v38  ;;  %2884 = vmatprep.mubr.msk.f32.mxu0 %vm339_vm1, %v1943_v23  ;;  %v347_v10 = vsel %vm339_vm1, %v3103_v8, 0.0 }
 0x9bd   : > { %2885 = vmatmul.mubr.msk.f32.gmra.mrb[48].mxu0 %vm339_vm1, %v1944_v11  ;;  %v1946_v39 = vmax.f32 %v1936_v37, 0.0  ;;  %v348_v12 = vadd.f32 %v347_v10, %v346_v9  ;;  %v2124_v9 = vpop.permute.xlu0 %2123  ;;  %v2128_v10 = vpop.permute.xlu1 %2127  ;;  %p3109_p12 = pnand %p3108_p11, %p3259_p5  ;;  %p3116_p2 = por %p3115_p1, %p3114_p0 }
 0x9be   : > { %v1945_v31 = vmax.f32 %v1931_v32, 0.0 }
 0x9bf   : > { %v350_v26 = vadd.f32 %v349_v14, %v348_v12  ;;  %p3110_p13 = pneg %p3109_p12 }
 0x9c0   : > { %2887 = vmatprep.mubr.msk.f32.mxu0 %vm339_vm1, %v1945_v31 }
 0x9c1   : > { %2888 = vmatmul.mubr.msk.f32.gmra.mrb[50].mxu0 %vm339_vm1, %v1946_v39  ;;  %v352_v6 = vadd.f32 %v351_v28, %v350_v26  ;;  %p3117_p3 = pnand %p3116_p2, %p3110_p13 }
 0x9c3   : > { %v354_v15 = vadd.f32 %v353_v33, %v352_v6 }
 0x9c5   : > { %v355_v43 = vrot.slane %v354_v15, 4 }
 0x9c7   : > { %v356_v17 = vadd.f32 %v355_v43, %v354_v15 }
 0x9c9   : > { %v357_v56 = vrot.slane %v356_v17, 2 }
 0x9cb   : > { %v358_v63 = vadd.f32 %v357_v56, %v356_v17 }
 0x9cd   : > { %v359_v0 = vrot.slane %v358_v63, 1 }
 0x9cf   : > { %v360_v4 = vadd.f32 %v359_v0, %v358_v63 }
 0x9d1   : > { %v2130_v12 = vsel %vm339_vm1, %v360_v4, %v2120_v2 }
 0x9d2   : > { %v2131_v14 = vsel %vm361_vm0, %v2130_v12, %v2124_v9 }
 0x9d3   : > { %v2133_v26 = vsel %vm2132_vm2, %v2131_v14, %v2128_v10 }
 0xa88   : > { %v2880_v5 = vpop.f32.mrb[44].mxu0 }
 0xa89   : > { %v2056_v25 = vadd.f32 %v2880_v5, %v2443_v29  ;;  %v2050_v24 = vpop.f32.mrb[45].mxu0 }
 0xa8a   : > { %v2051_v34 = vadd.f32 %v2443_v29, %v2050_v24 }
 0xa8b   : > { %v2090_v35 = vmax.f32 %v2056_v25, 0.0 }
 0xa8c   : > { %v2089_v36 = vmax.f32 %v2051_v34, 0.0  ;;  %v2883_v23 = vpop.f32.mrb[46].mxu0 }
 0xa8d   : > { %v2098_v11 = vsel %vm339_vm1, %v2090_v35, 0.0  ;;  %v2066_v37 = vadd.f32 %v2883_v23, %v2443_v29  ;;  %v2060_v38 = vpop.f32.mrb[47].mxu0 }
 0xa8e   : > { %v2097_v32 = vsel %vm339_vm1, %v2089_v36, 0.0  ;;  %v2061_v31 = vadd.f32 %v2443_v29, %v2060_v38 }
 0xa8f   : > { %v2099_v39 = vadd.f32 %v2098_v11, %v2097_v32  ;;  %v2092_v40 = vmax.f32 %v2066_v37, 0.0 }
 0xa90   : > { %v2091_v41 = vmax.f32 %v2061_v31, 0.0  ;;  %v2886_v42 = vpop.f32.mrb[48].mxu0 }
 0xa91   : > { %v2076_v44 = vadd.f32 %v2886_v42, %v2443_v29  ;;  %v2070_v45 = vpop.f32.mrb[49].mxu0  ;;  %v2102_v49 = vsel %vm339_vm1, %v2092_v40, 0.0 }
 0xa92   : > { %v2100_v46 = vsel %vm339_vm1, %v2091_v41, 0.0  ;;  %v2071_v47 = vadd.f32 %v2443_v29, %v2070_v45 }
 0xa93   : > { %v2101_v48 = vadd.f32 %v2100_v46, %v2099_v39  ;;  %v2094_v50 = vmax.f32 %v2076_v44, 0.0 }
 0xa94   : > { %v2093_v51 = vmax.f32 %v2071_v47, 0.0  ;;  %v2889_v16 = vpop.f32.mrb[50].mxu0 }
 0xa95   : > { %v2103_v18 = vadd.f32 %v2102_v49, %v2101_v48  ;;  %v2086_v19 = vadd.f32 %v2889_v16, %v2443_v29  ;;  %v2080_v20 = vpop.f32.mrb[51].mxu0  ;;  %v2106_v53 = vsel %vm339_vm1, %v2094_v50, 0.0 }
 0xa96   : > { %v2104_v21 = vsel %vm339_vm1, %v2093_v51, 0.0  ;;  %v2081_v52 = vadd.f32 %v2443_v29, %v2080_v20 }
 0xa97   : > { %v2105_v22 = vadd.f32 %v2104_v21, %v2103_v18  ;;  %v2096_v54 = vmax.f32 %v2086_v19, 0.0 }
 0xa98   : > { %v2095_v55 = vmax.f32 %v2081_v52, 0.0 }
 0xa99   : > { %v2107_v57 = vadd.f32 %v2106_v53, %v2105_v22  ;;  %v2110_v62 = vsel %vm339_vm1, %v2096_v54, 0.0 }
 0xa9a   : > { %v2108_v58 = vsel %vm339_vm1, %v2095_v55, 0.0 }
 0xa9b   : > { %v2109_v61 = vadd.f32 %v2108_v58, %v2107_v57 }
 0xa9d   : > { %v2111_v60 = vadd.f32 %v2110_v62, %v2109_v61 }
 0xa9f   : > { %v2112_v59 = vrot.slane %v2111_v60, 4 }
 0xaa1   : > { %v2113_v1 = vadd.f32 %v2112_v59, %v2111_v60 }
 0xaa3   : > { %v2114_v3 = vrot.slane %v2113_v1, 2 }
 0xaa5   : > { %v2115_v7 = vadd.f32 %v2114_v3, %v2113_v1 }
 0xaa7   : > { %v2116_v8 = vrot.slane %v2115_v7, 1 }
 0xaa9   : > { %v2117_v13 = vadd.f32 %v2116_v8, %v2115_v7 }
 0xaab   : > { %2452 = vmatprep.mubr.msk.f32.mxu1 %vm339_vm1, %v2117_v13 }
 0xaac   : > { %2223 = vmatmul.mubr.f32.vlgmr.msra.gmra.mrb[44].mxu1 %v2133_v26 }
 0xb7f   : > { %v2224_v28 = vpop.f32.mrb[44].mxu1 }
 0xb80   : > { %v2225_v29 = vadd.f32 %v2224_v28, %v2154_v27  ;;  %v2226_v5 = vpop.f32.mrb[45].mxu1 }
 0xb82   : > { %2229 = vst.msk [vmem:[%s312_s18] sm:$0x1] %vm2228_vm3, %v2225_v29 }
 0xb83   : > { %3120 = shalt.err (!%p3117_p3)
}
 0xb84   : > { %s3121_s25 = scalar_lea.hbm %s3810_s22, 16  ;;  %s3125_s17 = scalar_lea.hbm %s3860_s8, 128 }
 0xb85   : > { %p3122_p4 = scmp.ne.s32.totalorder %s3810_s22, %s3121_s25  ;;  %p3126_p9 = scmp.lt.u32.totalorder %s3810_s22, %s3860_s8 }
 0xb86   : > { %p3127_p10 = scmp.lt.u32.totalorder %s3125_s17, %s3121_s25  ;;  %p3129_p12 = scmp.lt.u32.totalorder %s3121_s25, %s3810_s22 }
 0xb87   : > { %p3123_p7 = pnand %p3122_p4, %p3259_p5 }
 0xb88   : > { %p3128_p11 = por %p3127_p10, %p3126_p9 }
 0xb89   : > { %p3124_p8 = pneg %p3123_p7 }
 0xb8a   : > { %p3130_p13 = por %p3129_p12, %p3128_p11 }
 0xb8c   : > { %p3131_p0 = pnand %p3130_p13, %p3124_p8 }
 0xb8e   : > { %3134 = shalt.err (!%p3131_p0)
}
 0xb8f   : > { %3056 = dma.vmem_to_hbm [thread:$0]  (%p3259_p5), %s3812_s19, 16, %s3810_s22, %s2231_s23  }
 0xb90 PF: > { %p3062_p1 = scmp.ge.s32.totalorder %s3169_s30, 2  ;;  %s2255_s21 = sand.u32 1, %s3157_s27  }
 0xb91   : > { %s2256_s24 = scalar_lea.sflag [#allocation3], %s2255_s21 }
 0xb92   : > { %p3059_p2 = pnand %p3062_p1, %p3263_p6 }
 0xb94   : > { %3152 = dma.done.wait (!%p3059_p2), %s2256_s24, 16  }
 0xb95   : > { %3154 = vsyncadd (!%p3059_p2), %s2256_s24, 4294967280  ;;  %p18_p3 = scmp.ge.s32.totalorder %s3246_s11, 10   ;;  %s3863_s27 = smov %s3161_s28 }
 0xb96   : > { %s3864_s28 = smov %s3165_s29  ;;  %s3865_s29 = smov %s3257_s14 }
 0xb97   : > { %s3866_s30 = smov %s3246_s11  ;;  %20 = sbr.rel (!%p18_p3) target bundleno = 3 (0x3), region = 102 }
 0xb9e   :  { %2260 = vsyncpa [#allocation3], 1 }
 0xb9f   :  { %2262 = vsyncpa [#allocation3 + $0x1], 1 }

</bundles_post_ra>
